<compile_context>
chip_gen: v5e
topology: v5e:2x2
jax: 0.10.0
libtpu: 0.0.40
codegen_flags: <defaults>
</compile_context>

<pallas_src>
import math
import functools

import jax
import jax.numpy as jnp
from jax.experimental import pallas as pl
from jax.experimental.pallas import tpu as pltpu

MATMUL_DTYPE = jnp.bfloat16   # MXU-native dtype on v5e / v6e / v7x
LN_EPS = 1e-5


# --------------------------------------------------------------------------
# Helpers
# --------------------------------------------------------------------------
def _pick_chunk(total, candidates):
    """Largest candidate that evenly divides `total`; falls back to `total`
    (a full-extent block is always a legal BlockSpec)."""
    for c in candidates:
        if c <= total and total % c == 0:
            return c
    return total


# --------------------------------------------------------------------------
# Kernel 1: hoisted input projection  gx_g = x @ W_ih_g + bias_g   (3 gates)
# --------------------------------------------------------------------------
def _in_proj_kernel(x_ref, wr_ref, wz_ref, wn_ref, br_ref, bz_ref, bn_ref,
                    gr_ref, gz_ref, gn_ref):
    x = x_ref[...].astype(MATMUL_DTYPE)
    gr_ref[...] = jnp.dot(x, wr_ref[...], preferred_element_type=jnp.float32) + br_ref[...]
    gz_ref[...] = jnp.dot(x, wz_ref[...], preferred_element_type=jnp.float32) + bz_ref[...]
    gn_ref[...] = jnp.dot(x, wn_ref[...], preferred_element_type=jnp.float32) + bn_ref[...]


def _input_projection(x_tm, w_r, w_z, w_n, b_r, b_z, b_n):
    """x_tm: (T, B, D) f32.  w_*: (D, H) bf16.  b_*: (1, H) f32.
    Returns three (T, B, H) f32 gate pre-activations."""
    T, B, D = x_tm.shape
    H = w_r.shape[1]
    M = T * B
    x2 = x_tm.reshape(M, D)                      # contiguous, free reshape

    # Row-tile must be a multiple of 8 sublanes (or the full extent).
    tm = _pick_chunk(M, (512, 256, 128, 64, 32, 16, 8))
    grid = (M // tm,)

    row_spec = pl.BlockSpec((tm, D), lambda i: (i, 0))
    out_spec = pl.BlockSpec((tm, H), lambda i: (i, 0))
    w_spec = pl.BlockSpec((D, H), lambda i: (0, 0))
    b_spec = pl.BlockSpec((1, H), lambda i: (0, 0))

    gr, gz, gn = pl.pallas_call(
        _in_proj_kernel,
        grid=grid,
        in_specs=[row_spec, w_spec, w_spec, w_spec, b_spec, b_spec, b_spec],
        out_specs=(out_spec, out_spec, out_spec),
        out_shape=tuple(jax.ShapeDtypeStruct((M, H), jnp.float32) for _ in range(3)),
        compiler_params=pltpu.CompilerParams(dimension_semantics=("parallel",)),
    )(x2, w_r, w_z, w_n, b_r, b_z, b_n)
    return gr.reshape(T, B, H), gz.reshape(T, B, H), gn.reshape(T, B, H)


# --------------------------------------------------------------------------
# Kernel 2: time-chunked GRU recurrence (only h @ W_hh work per step)
# --------------------------------------------------------------------------
def _gru_scan_kernel(gr_ref, gz_ref, gn_ref, h0_ref,
                     whr_ref, whz_ref, whn_ref, bhn_ref,
                     y_ref, hT_ref, h_scr):
    # gr/gz/gn: (chunk_T, B, H) precomputed gate inputs (biases folded, except b_hh_n)
    # h carried across grid chunks in VMEM scratch h_scr: (B, H) f32
    @pl.when(pl.program_id(0) == 0)
    def _():
        h_scr[...] = h0_ref[...]

    w_r = whr_ref[...]
    w_z = whz_ref[...]
    w_n = whn_ref[...]
    b_n = bhn_ref[...]
    chunk_t = gr_ref.shape[0]

    h = h_scr[...]
    for t in range(chunk_t):                     # static unroll (chunk_t <= 32)
        hb = h.astype(w_r.dtype)
        gh_r = jnp.dot(hb, w_r, preferred_element_type=jnp.float32)
        gh_z = jnp.dot(hb, w_z, preferred_element_type=jnp.float32)
        gh_n = jnp.dot(hb, w_n, preferred_element_type=jnp.float32) + b_n
        r = jax.nn.sigmoid(gr_ref[t] + gh_r)
        z = jax.nn.sigmoid(gz_ref[t] + gh_z)
        n = jnp.tanh(gn_ref[t] + r * gh_n)
        h = (1.0 - z) * n + z * h
        y_ref[t] = h
    h_scr[...] = h

    @pl.when(pl.program_id(0) == pl.num_programs(0) - 1)
    def _():
        hT_ref[...] = h


def _gru_recurrence(gx_r, gx_z, gx_n, h0, whh_r, whh_z, whh_n, bhh_n):
    T, B, H = gx_r.shape
    ct = _pick_chunk(T, (32, 16, 8, 4, 2, 1))    # leading-axis chunk: no (8,128) rule
    grid = (T // ct,)

    gx_spec = pl.BlockSpec((ct, B, H), lambda c: (c, 0, 0))
    h_spec = pl.BlockSpec((B, H), lambda c: (0, 0))
    w_spec = pl.BlockSpec((H, H), lambda c: (0, 0))
    b_spec = pl.BlockSpec((1, H), lambda c: (0, 0))

    y, hT = pl.pallas_call(
        _gru_scan_kernel,
        grid=grid,
        in_specs=[gx_spec, gx_spec, gx_spec, h_spec, w_spec, w_spec, w_spec, b_spec],
        out_specs=(pl.BlockSpec((ct, B, H), lambda c: (c, 0, 0)),
                   pl.BlockSpec((B, H), lambda c: (0, 0))),
        out_shape=(jax.ShapeDtypeStruct((T, B, H), jnp.float32),
                   jax.ShapeDtypeStruct((B, H), jnp.float32)),
        scratch_shapes=[pltpu.VMEM((B, H), jnp.float32)],
        compiler_params=pltpu.CompilerParams(dimension_semantics=("arbitrary",)),
    )(gx_r, gx_z, gx_n, h0, whh_r, whh_z, whh_n, bhh_n)
    return y, hT


# --------------------------------------------------------------------------
# Kernel 3: fused (optional residual add) + LayerNorm + (optional TimeReduction)
#           All tensors stay time-major (T, B, H): lane dim is H, no transposes.
# --------------------------------------------------------------------------
def _epilogue_kernel(has_res, rf, t_real, *refs):
    if has_res:
        y_ref, res_ref, g_ref, b_ref, o_ref = refs
        x = y_ref[...] + res_ref[...]
    else:
        y_ref, g_ref, b_ref, o_ref = refs
        x = y_ref[...]

    mean = jnp.mean(x, axis=-1, keepdims=True)
    c = x - mean
    var = jnp.mean(c * c, axis=-1, keepdims=True)
    z = c * jax.lax.rsqrt(var + LN_EPS) * g_ref[...] + b_ref[...]

    if rf > 1:
        ctr, B, H = z.shape
        if t_real is not None:
            # The PyTorch reference zero-pads AFTER LayerNorm; zero the padded
            # tail rows back out before averaging.
            t0 = pl.program_id(0) * ctr
            tid = jax.lax.broadcasted_iota(jnp.int32, (ctr, B, H), 0) + t0
            z = jnp.where(tid < t_real, z, 0.0)
        zr = z.reshape(ctr // rf, rf, B, H)      # leading-axis split: layout no-op
        acc = zr[:, 0]
        for k in range(1, rf):                   # slice-add (VPU), no XLU reduce
            acc = acc + zr[:, k]
        z = acc * (1.0 / rf)
    o_ref[...] = z


def _ln_epilogue(y_tm, res_tm, gamma, beta, rf):
    """y_tm: (T, B, H) GRU output.  res_tm: (T, B, H) residual or None.
    Returns time-major (T_out, B, H) with T_out = ceil(T/rf) when rf > 1."""
    T, B, H = y_tm.shape
    g = gamma.reshape(1, 1, H)
    b = beta.reshape(1, 1, H)

    t_real = None
    if rf > 1:
        pad = (-T) % rf
        if pad:
            # TODO(synk): handle the ragged tail fully in-kernel (avoid jnp.pad copy).
            t_real = T
            y_tm = jnp.pad(y_tm, ((0, pad), (0, 0), (0, 0)))
            if res_tm is not None:
                res_tm = jnp.pad(res_tm, ((0, pad), (0, 0), (0, 0)))
            T = T + pad
        T_out = T // rf
    else:
        T_out = T

    ct_out = _pick_chunk(T_out, (128, 64, 32, 16, 8, 4, 2, 1))
    ct_in = ct_out * rf
    grid = (T_out // ct_out,)

    in_spec = pl.BlockSpec((ct_in, B, H), lambda c: (c, 0, 0))
    gb_spec = pl.BlockSpec((1, 1, H), lambda c: (0, 0, 0))
    out_spec = pl.BlockSpec((ct_out, B, H), lambda c: (c, 0, 0))

    has_res = res_tm is not None
    kernel = functools.partial(_epilogue_kernel, has_res, rf, t_real)
    ins = [y_tm] + ([res_tm] if has_res else []) + [g, b]
    in_specs = [in_spec] + ([in_spec] if has_res else []) + [gb_spec, gb_spec]

    return pl.pallas_call(
        kernel,
        grid=grid,
        in_specs=in_specs,
        out_specs=out_spec,
        out_shape=jax.ShapeDtypeStruct((T_out, B, H), jnp.float32),
        compiler_params=pltpu.CompilerParams(dimension_semantics=("parallel",)),
    )(*ins)


# --------------------------------------------------------------------------
# Parameter preparation (per-gate split, weight transpose, bias folding)
# --------------------------------------------------------------------------
def _prep_layer(p):
    w_ih, w_hh, b_ih, b_hh = p["w_ih"], p["w_hh"], p["b_ih"], p["b_hh"]
    H = w_hh.shape[1]

    def split3(w):
        return w[0:H], w[H:2 * H], w[2 * H:3 * H]

    wir, wiz, win = split3(w_ih)
    whr, whz, whn = split3(w_hh)
    bir, biz, bin_ = split3(b_ih)
    bhr, bhz, bhn = split3(b_hh)
    return dict(
        wih_r=wir.T.astype(MATMUL_DTYPE), wih_z=wiz.T.astype(MATMUL_DTYPE),
        wih_n=win.T.astype(MATMUL_DTYPE),
        whh_r=whr.T.astype(MATMUL_DTYPE), whh_z=whz.T.astype(MATMUL_DTYPE),
        whh_n=whn.T.astype(MATMUL_DTYPE),
        # r/z biases (from b_ih AND b_hh) fold into the precomputed gx.
        # b_hh_n is applied to h@W_hh_n BEFORE the r* gating -> stays in the
        # recurrence kernel.  b_ih_n folds into gx_n.
        b_r=(bir + bhr).reshape(1, H),
        b_z=(biz + bhz).reshape(1, H),
        b_n=bin_.reshape(1, H),
        bhh_n=bhn.reshape(1, H),
        ln_g=p["ln_g"], ln_b=p["ln_b"],
    )


# --------------------------------------------------------------------------
# ResLayerNormGRU forward (matches the PyTorch module semantics; dropout=0)
# --------------------------------------------------------------------------
def init_params(key, input_size, hidden_size, num_layers):
    params = []
    bound = 1.0 / math.sqrt(hidden_size)
    for i in range(num_layers):
        d = input_size if i == 0 else hidden_size
        key, k0, k1, k2, k3, k4, k5 = jax.random.split(key, 7)
        params.append(dict(
            w_ih=jax.random.uniform(k0, (3 * hidden_size, d), jnp.float32, -bound, bound),
            w_hh=jax.random.uniform(k1, (3 * hidden_size, hidden_size), jnp.float32, -bound, bound),
            b_ih=jax.random.uniform(k2, (3 * hidden_size,), jnp.float32, -bound, bound),
            b_hh=jax.random.uniform(k3, (3 * hidden_size,), jnp.float32, -bound, bound),
            ln_g=jnp.ones((hidden_size,), jnp.float32)
                 + 0.1 * jax.random.normal(k4, (hidden_size,), jnp.float32),
            ln_b=0.1 * jax.random.normal(k5, (hidden_size,), jnp.float32),
        ))
    return params


def res_layer_norm_gru_forward(params, xs, hiddens=None,
                               time_reductions=(1,), reduction_factor=2):
    num_layers = len(params)
    B = xs.shape[0]
    H = params[0]["w_hh"].shape[1]
    hs = jnp.zeros((num_layers, B, H), xs.dtype) if hiddens is None else hiddens

    x_tm = jnp.transpose(xs, (1, 0, 2))          # batch-first -> time-major (once)
    new_hs = []
    for i, raw in enumerate(params):
        p = _prep_layer(raw)
        gx_r, gx_z, gx_n = _input_projection(
            x_tm, p["wih_r"], p["wih_z"], p["wih_n"], p["b_r"], p["b_z"], p["b_n"])
        y_tm, hT = _gru_recurrence(
            gx_r, gx_z, gx_n, hs[i], p["whh_r"], p["whh_z"], p["whh_n"], p["bhh_n"])
        res = x_tm if i != 0 else None           # layer 0: plain LN, no zero residual
        rf = reduction_factor if i in time_reductions else 1
        x_tm = _ln_epilogue(y_tm, res, p["ln_g"], p["ln_b"], rf)
        new_hs.append(hT[None])                  # (1, B, H)
    xs_out = jnp.transpose(x_tm, (1, 0, 2))      # back to batch-first (once)
    return xs_out, jnp.concatenate(new_hs, axis=0)


# --------------------------------------------------------------------------
# Pure-JAX reference (same bf16 matmul casting as the kernels) for checking
# --------------------------------------------------------------------------
def _reference_forward(params, xs, time_reductions=(1,), reduction_factor=2):
    B, T, _ = xs.shape
    H = params[0]["w_hh"].shape[1]
    x = xs
    h_all = []
    for i, raw in enumerate(params):
        w_ih, w_hh, b_ih, b_hh = raw["w_ih"], raw["w_hh"], raw["b_ih"], raw["b_hh"]
        wir, wiz, win = w_ih[0:H], w_ih[H:2 * H], w_ih[2 * H:3 * H]
        whr, whz, whn = w_hh[0:H], w_hh[H:2 * H], w_hh[2 * H:3 * H]
        bir, biz, bin_ = b_ih[0:H], b_ih[H:2 * H], b_ih[2 * H:3 * H]
        bhr, bhz, bhn = b_hh[0:H], b_hh[H:2 * H], b_hh[2 * H:3 * H]
        bf = lambda a: a.astype(jnp.bfloat16)

        def step(h, x_t):
            xb, hb = bf(x_t), bf(h)
            gi_r = jnp.dot(xb, bf(wir.T), preferred_element_type=jnp.float32) + bir
            gi_z = jnp.dot(xb, bf(wiz.T), preferred_element_type=jnp.float32) + biz
            gi_n = jnp.dot(xb, bf(win.T), preferred_element_type=jnp.float32) + bin_
            gh_r = jnp.dot(hb, bf(whr.T), preferred_element_type=jnp.float32) + bhr
            gh_z = jnp.dot(hb, bf(whz.T), preferred_element_type=jnp.float32) + bhz
            gh_n = jnp.dot(hb, bf(whn.T), preferred_element_type=jnp.float32) + bhn
            r = jax.nn.sigmoid(gi_r + gh_r)
            z = jax.nn.sigmoid(gi_z + gh_z)
            n = jnp.tanh(gi_n + r * gh_n)
            h_new = (1.0 - z) * n + z * h
            return h_new, h_new

        h0 = jnp.zeros((B, H), jnp.float32)
        hT, y_tm = jax.lax.scan(step, h0, jnp.transpose(x, (1, 0, 2)))
        y = jnp.transpose(y_tm, (1, 0, 2))
        y = y if i == 0 else x + y
        mean = jnp.mean(y, axis=-1, keepdims=True)
        var = jnp.mean((y - mean) ** 2, axis=-1, keepdims=True)
        y = (y - mean) * jax.lax.rsqrt(var + LN_EPS) * raw["ln_g"] + raw["ln_b"]
        if i in time_reductions:
            rf = reduction_factor
            t = y.shape[1]
            pad = (-t) % rf
            if pad:
                y = jnp.pad(y, ((0, 0), (0, pad), (0, 0)))
            y = y.reshape(B, -1, rf, H).mean(axis=2)
        x = y
        h_all.append(hT[None])
    return x, jnp.concatenate(h_all, axis=0)


if __name__ == "__main__":
    B, T = 2, 8
    input_size, hidden_size, num_layers = 32, 32, 2

    key = jax.random.PRNGKey(0)
    key, kx = jax.random.split(key)
    xs = jax.random.normal(kx, (B, T, input_size), jnp.float32)

    params = init_params(key, input_size, hidden_size, num_layers)

    fwd = jax.jit(functools.partial(res_layer_norm_gru_forward,
                                    time_reductions=(1,), reduction_factor=2))
    ys, hs = fwd(params, xs)
    jax.block_until_ready((ys, hs))

    assert ys.shape == (B, T // 2, hidden_size), ys.shape   # layer 1 time-reduced
    assert hs.shape == (num_layers, B, hidden_size), hs.shape
    assert bool(jnp.all(jnp.isfinite(ys))) and bool(jnp.all(jnp.isfinite(hs)))

    ys_ref, hs_ref = _reference_forward(params, xs,
                                        time_reductions=(1,), reduction_factor=2)
    err_y = float(jnp.max(jnp.abs(ys - ys_ref)))
    err_h = float(jnp.max(jnp.abs(hs - hs_ref)))
    assert err_y < 2e-2 and err_h < 2e-2, (err_y, err_h)

    print("KERNEL_OK")
</pallas_src>

<mosaic_0001>
module attributes {stable_mosaic.version = 11 : i64} {
  func.func @_in_proj_kernel(%arg0: i32, %arg1: memref<16x32xf32, #tpu.memory_space<vmem>>, %arg2: memref<32x32xbf16, #tpu.memory_space<vmem>>, %arg3: memref<32x32xbf16, #tpu.memory_space<vmem>>, %arg4: memref<32x32xbf16, #tpu.memory_space<vmem>>, %arg5: memref<1x32xf32, #tpu.memory_space<vmem>>, %arg6: memref<1x32xf32, #tpu.memory_space<vmem>>, %arg7: memref<1x32xf32, #tpu.memory_space<vmem>>, %arg8: memref<16x32xf32, #tpu.memory_space<vmem>>, %arg9: memref<16x32xf32, #tpu.memory_space<vmem>>, %arg10: memref<16x32xf32, #tpu.memory_space<vmem>>) attributes {dimension_semantics = [#tpu.dimension_semantics<parallel>], iteration_bounds = array<i64: 1>, scalar_prefetch = 0 : i64, scratch_operands = 0 : i64, tpu.core_type = #tpu.core_type<tc>, window_params = [{transform_indices = @transform_0, window_bounds = array<i64: 16, 32>}, {pipeline_mode = #tpu.pipeline_mode<synchronous>, transform_indices = @transform_1, window_bounds = array<i64: 32, 32>}, {pipeline_mode = #tpu.pipeline_mode<synchronous>, transform_indices = @transform_2, window_bounds = array<i64: 32, 32>}, {pipeline_mode = #tpu.pipeline_mode<synchronous>, transform_indices = @transform_3, window_bounds = array<i64: 32, 32>}, {pipeline_mode = #tpu.pipeline_mode<synchronous>, transform_indices = @transform_4, window_bounds = array<i64: 1, 32>}, {pipeline_mode = #tpu.pipeline_mode<synchronous>, transform_indices = @transform_5, window_bounds = array<i64: 1, 32>}, {pipeline_mode = #tpu.pipeline_mode<synchronous>, transform_indices = @transform_6, window_bounds = array<i64: 1, 32>}, {transform_indices = @transform_7, window_bounds = array<i64: 16, 32>}, {transform_indices = @transform_8, window_bounds = array<i64: 16, 32>}, {transform_indices = @transform_9, window_bounds = array<i64: 16, 32>}]} {
    %c0 = arith.constant 0 : index
    %c0_0 = arith.constant 0 : index
    %0 = vector.load %arg1[%c0, %c0_0] : memref<16x32xf32, #tpu.memory_space<vmem>>, vector<16x32xf32>
    %1 = arith.truncf %0 : vector<16x32xf32> to vector<16x32xbf16>
    %c0_1 = arith.constant 0 : index
    %c0_2 = arith.constant 0 : index
    %2 = vector.load %arg2[%c0_1, %c0_2] : memref<32x32xbf16, #tpu.memory_space<vmem>>, vector<32x32xbf16>
    %cst = arith.constant dense<0.000000e+00> : vector<16x32xf32>
    %3 = tpu.matmul %1, %2, %cst {dimension_numbers = #tpu.dot_dimension_numbers<[1], [0], [0], [1], [0, 0, 1, 1], [], []>} : vector<16x32xbf16>, vector<32x32xbf16>, vector<16x32xf32> -> vector<16x32xf32>
    %c0_3 = arith.constant 0 : index
    %c0_4 = arith.constant 0 : index
    %4 = vector.load %arg5[%c0_3, %c0_4] : memref<1x32xf32, #tpu.memory_space<vmem>>, vector<1x32xf32>
    %5 = vector.broadcast %4 : vector<1x32xf32> to vector<16x32xf32>
    %6 = arith.addf %3, %5 : vector<16x32xf32>
    %c0_5 = arith.constant 0 : index
    %c0_6 = arith.constant 0 : index
    %7 = vector.load %arg8[%c0_5, %c0_6] : memref<16x32xf32, #tpu.memory_space<vmem>>, vector<16x32xf32>
    tpu.vector_store %arg8[%c0_5, %c0_6], %6 {strides = array<i32>} : memref<16x32xf32, #tpu.memory_space<vmem>>, vector<16x32xf32>,
    %c0_7 = arith.constant 0 : index
    %c0_8 = arith.constant 0 : index
    %8 = vector.load %arg3[%c0_7, %c0_8] : memref<32x32xbf16, #tpu.memory_space<vmem>>, vector<32x32xbf16>
    %cst_9 = arith.constant dense<0.000000e+00> : vector<16x32xf32>
    %9 = tpu.matmul %1, %8, %cst_9 {dimension_numbers = #tpu.dot_dimension_numbers<[1], [0], [0], [1], [0, 0, 1, 1], [], []>} : vector<16x32xbf16>, vector<32x32xbf16>, vector<16x32xf32> -> vector<16x32xf32>
    %c0_10 = arith.constant 0 : index
    %c0_11 = arith.constant 0 : index
    %10 = vector.load %arg6[%c0_10, %c0_11] : memref<1x32xf32, #tpu.memory_space<vmem>>, vector<1x32xf32>
    %11 = vector.broadcast %10 : vector<1x32xf32> to vector<16x32xf32>
    %12 = arith.addf %9, %11 : vector<16x32xf32>
    %c0_12 = arith.constant 0 : index
    %c0_13 = arith.constant 0 : index
    %13 = vector.load %arg9[%c0_12, %c0_13] : memref<16x32xf32, #tpu.memory_space<vmem>>, vector<16x32xf32>
    tpu.vector_store %arg9[%c0_12, %c0_13], %12 {strides = array<i32>} : memref<16x32xf32, #tpu.memory_space<vmem>>, vector<16x32xf32>,
    %c0_14 = arith.constant 0 : index
    %c0_15 = arith.constant 0 : index
    %14 = vector.load %arg4[%c0_14, %c0_15] : memref<32x32xbf16, #tpu.memory_space<vmem>>, vector<32x32xbf16>
    %cst_16 = arith.constant dense<0.000000e+00> : vector<16x32xf32>
    %15 = tpu.matmul %1, %14, %cst_16 {dimension_numbers = #tpu.dot_dimension_numbers<[1], [0], [0], [1], [0, 0, 1, 1], [], []>} : vector<16x32xbf16>, vector<32x32xbf16>, vector<16x32xf32> -> vector<16x32xf32>
    %c0_17 = arith.constant 0 : index
    %c0_18 = arith.constant 0 : index
    %16 = vector.load %arg7[%c0_17, %c0_18] : memref<1x32xf32, #tpu.memory_space<vmem>>, vector<1x32xf32>
    %17 = vector.broadcast %16 : vector<1x32xf32> to vector<16x32xf32>
    %18 = arith.addf %15, %17 : vector<16x32xf32>
    %c0_19 = arith.constant 0 : index
    %c0_20 = arith.constant 0 : index
    %19 = vector.load %arg10[%c0_19, %c0_20] : memref<16x32xf32, #tpu.memory_space<vmem>>, vector<16x32xf32>
    tpu.vector_store %arg10[%c0_19, %c0_20], %18 {strides = array<i32>} : memref<16x32xf32, #tpu.memory_space<vmem>>, vector<16x32xf32>,
    return
  }
  func.func @transform_0(%arg0: i32) -> (i32, i32) {
    %c0_i32 = arith.constant 0 : i32
    %c0_i32_0 = arith.constant 0 : i32
    return %arg0, %c0_i32 : i32, i32
  }
  func.func @transform_1(%arg0: i32) -> (i32, i32) {
    %c0_i32 = arith.constant 0 : i32
    %c0_i32_0 = arith.constant 0 : i32
    %c0_i32_1 = arith.constant 0 : i32
    return %c0_i32, %c0_i32_0 : i32, i32
  }
  func.func @transform_2(%arg0: i32) -> (i32, i32) {
    %c0_i32 = arith.constant 0 : i32
    %c0_i32_0 = arith.constant 0 : i32
    %c0_i32_1 = arith.constant 0 : i32
    return %c0_i32, %c0_i32_0 : i32, i32
  }
  func.func @transform_3(%arg0: i32) -> (i32, i32) {
    %c0_i32 = arith.constant 0 : i32
    %c0_i32_0 = arith.constant 0 : i32
    %c0_i32_1 = arith.constant 0 : i32
    return %c0_i32, %c0_i32_0 : i32, i32
  }
  func.func @transform_4(%arg0: i32) -> (i32, i32) {
    %c0_i32 = arith.constant 0 : i32
    %c0_i32_0 = arith.constant 0 : i32
    %c0_i32_1 = arith.constant 0 : i32
    return %c0_i32, %c0_i32_0 : i32, i32
  }
  func.func @transform_5(%arg0: i32) -> (i32, i32) {
    %c0_i32 = arith.constant 0 : i32
    %c0_i32_0 = arith.constant 0 : i32
    %c0_i32_1 = arith.constant 0 : i32
    return %c0_i32, %c0_i32_0 : i32, i32
  }
  func.func @transform_6(%arg0: i32) -> (i32, i32) {
    %c0_i32 = arith.constant 0 : i32
    %c0_i32_0 = arith.constant 0 : i32
    %c0_i32_1 = arith.constant 0 : i32
    return %c0_i32, %c0_i32_0 : i32, i32
  }
  func.func @transform_7(%arg0: i32) -> (i32, i32) {
    %c0_i32 = arith.constant 0 : i32
    %c0_i32_0 = arith.constant 0 : i32
    return %arg0, %c0_i32 : i32, i32
  }
  func.func @transform_8(%arg0: i32) -> (i32, i32) {
    %c0_i32 = arith.constant 0 : i32
    %c0_i32_0 = arith.constant 0 : i32
    return %arg0, %c0_i32 : i32, i32
  }
  func.func @transform_9(%arg0: i32) -> (i32, i32) {
    %c0_i32 = arith.constant 0 : i32
    %c0_i32_0 = arith.constant 0 : i32
    return %arg0, %c0_i32 : i32, i32
  }
}

module attributes {stable_mosaic.version = 11 : i64} {
  func.func @_epilogue_kernel(%arg0: i32, %arg1: memref<8x2x32xf32, #tpu.memory_space<vmem>>, %arg2: memref<1x1x32xf32, #tpu.memory_space<vmem>>, %arg3: memref<1x1x32xf32, #tpu.memory_space<vmem>>, %arg4: memref<8x2x32xf32, #tpu.memory_space<vmem>>) attributes {dimension_semantics = [#tpu.dimension_semantics<parallel>], iteration_bounds = array<i64: 1>, scalar_prefetch = 0 : i64, scratch_operands = 0 : i64, tpu.core_type = #tpu.core_type<tc>, window_params = [{transform_indices = @transform_0, window_bounds = array<i64: 8, 2, 32>}, {pipeline_mode = #tpu.pipeline_mode<synchronous>, transform_indices = @transform_1, window_bounds = array<i64: 1, 1, 32>}, {pipeline_mode = #tpu.pipeline_mode<synchronous>, transform_indices = @transform_2, window_bounds = array<i64: 1, 1, 32>}, {transform_indices = @transform_3, window_bounds = array<i64: 8, 2, 32>}]} {
    %c0 = arith.constant 0 : index
    %c0_0 = arith.constant 0 : index
    %c0_1 = arith.constant 0 : index
    %0 = vector.load %arg1[%c0, %c0_0, %c0_1] : memref<8x2x32xf32, #tpu.memory_space<vmem>>, vector<8x2x32xf32>
    %cst = arith.constant dense<0.000000e+00> : vector<8x2xf32>
    %1 = vector.multi_reduction <add>, %0, %cst [2] : vector<8x2x32xf32> to vector<8x2xf32>
    %2 = vector.shape_cast %1 : vector<8x2xf32> to vector<8x2x1xf32>
    %cst_2 = arith.constant 3.200000e+01 : f32
    %3 = vector.broadcast %cst_2 : f32 to vector<8x2x1xf32>
    %4 = arith.divf %2, %3 : vector<8x2x1xf32>
    %5 = vector.broadcast %4 : vector<8x2x1xf32> to vector<8x2x32xf32>
    %6 = arith.subf %0, %5 : vector<8x2x32xf32>
    %7 = arith.mulf %6, %6 : vector<8x2x32xf32>
    %cst_3 = arith.constant dense<0.000000e+00> : vector<8x2xf32>
    %8 = vector.multi_reduction <add>, %7, %cst_3 [2] : vector<8x2x32xf32> to vector<8x2xf32>
    %9 = vector.shape_cast %8 : vector<8x2xf32> to vector<8x2x1xf32>
    %cst_4 = arith.constant 3.200000e+01 : f32
    %10 = vector.broadcast %cst_4 : f32 to vector<8x2x1xf32>
    %11 = arith.divf %9, %10 : vector<8x2x1xf32>
    %cst_5 = arith.constant 9.99999974E-6 : f32
    %12 = vector.broadcast %cst_5 : f32 to vector<8x2x1xf32>
    %13 = arith.addf %11, %12 : vector<8x2x1xf32>
    %14 = math.rsqrt %13 : vector<8x2x1xf32>
    %15 = vector.broadcast %14 : vector<8x2x1xf32> to vector<8x2x32xf32>
    %16 = arith.mulf %6, %15 : vector<8x2x32xf32>
    %c0_6 = arith.constant 0 : index
    %c0_7 = arith.constant 0 : index
    %c0_8 = arith.constant 0 : index
    %17 = vector.load %arg2[%c0_6, %c0_7, %c0_8] : memref<1x1x32xf32, #tpu.memory_space<vmem>>, vector<1x1x32xf32>
    %18 = vector.broadcast %17 : vector<1x1x32xf32> to vector<8x2x32xf32>
    %19 = arith.mulf %16, %18 : vector<8x2x32xf32>
    %c0_9 = arith.constant 0 : index
    %c0_10 = arith.constant 0 : index
    %c0_11 = arith.constant 0 : index
    %20 = vector.load %arg3[%c0_9, %c0_10, %c0_11] : memref<1x1x32xf32, #tpu.memory_space<vmem>>, vector<1x1x32xf32>
    %21 = vector.broadcast %20 : vector<1x1x32xf32> to vector<8x2x32xf32>
    %22 = arith.addf %19, %21 : vector<8x2x32xf32>
    %c0_12 = arith.constant 0 : index
    %c0_13 = arith.constant 0 : index
    %c0_14 = arith.constant 0 : index
    %23 = vector.load %arg4[%c0_12, %c0_13, %c0_14] : memref<8x2x32xf32, #tpu.memory_space<vmem>>, vector<8x2x32xf32>
    tpu.vector_store %arg4[%c0_12, %c0_13, %c0_14], %22 {strides = array<i32>} : memref<8x2x32xf32, #tpu.memory_space<vmem>>, vector<8x2x32xf32>,
    return
  }
  func.func @transform_0(%arg0: i32) -> (i32, i32, i32) {
    %c0_i32 = arith.constant 0 : i32
    %c0_i32_0 = arith.constant 0 : i32
    %c0_i32_1 = arith.constant 0 : i32
    return %arg0, %c0_i32, %c0_i32_0 : i32, i32, i32
  }
  func.func @transform_1(%arg0: i32) -> (i32, i32, i32) {
    %c0_i32 = arith.constant 0 : i32
    %c0_i32_0 = arith.constant 0 : i32
    %c0_i32_1 = arith.constant 0 : i32
    %c0_i32_2 = arith.constant 0 : i32
    return %c0_i32, %c0_i32_0, %c0_i32_1 : i32, i32, i32
  }
  func.func @transform_2(%arg0: i32) -> (i32, i32, i32) {
    %c0_i32 = arith.constant 0 : i32
    %c0_i32_0 = arith.constant 0 : i32
    %c0_i32_1 = arith.constant 0 : i32
    %c0_i32_2 = arith.constant 0 : i32
    return %c0_i32, %c0_i32_0, %c0_i32_1 : i32, i32, i32
  }
  func.func @transform_3(%arg0: i32) -> (i32, i32, i32) {
    %c0_i32 = arith.constant 0 : i32
    %c0_i32_0 = arith.constant 0 : i32
    %c0_i32_1 = arith.constant 0 : i32
    return %arg0, %c0_i32, %c0_i32_0 : i32, i32, i32
  }
}

module attributes {stable_mosaic.version = 11 : i64} {
  func.func @_gru_scan_kernel(%arg0: i32, %arg1: memref<8x2x32xf32, #tpu.memory_space<vmem>>, %arg2: memref<8x2x32xf32, #tpu.memory_space<vmem>>, %arg3: memref<8x2x32xf32, #tpu.memory_space<vmem>>, %arg4: memref<2x32xf32, #tpu.memory_space<vmem>>, %arg5: memref<32x32xbf16, #tpu.memory_space<vmem>>, %arg6: memref<32x32xbf16, #tpu.memory_space<vmem>>, %arg7: memref<32x32xbf16, #tpu.memory_space<vmem>>, %arg8: memref<1x32xf32, #tpu.memory_space<vmem>>, %arg9: memref<8x2x32xf32, #tpu.memory_space<vmem>>, %arg10: memref<2x32xf32, #tpu.memory_space<vmem>>, %arg11: memref<2x32xf32, #tpu.memory_space<vmem>>) attributes {dimension_semantics = [#tpu.dimension_semantics<arbitrary>], iteration_bounds = array<i64: 1>, scalar_prefetch = 0 : i64, scratch_operands = 1 : i64, tpu.core_type = #tpu.core_type<tc>, window_params = [{transform_indices = @transform_0, window_bounds = array<i64: 8, 2, 32>}, {transform_indices = @transform_1, window_bounds = array<i64: 8, 2, 32>}, {transform_indices = @transform_2, window_bounds = array<i64: 8, 2, 32>}, {pipeline_mode = #tpu.pipeline_mode<synchronous>, transform_indices = @transform_3, window_bounds = array<i64: 2, 32>}, {pipeline_mode = #tpu.pipeline_mode<synchronous>, transform_indices = @transform_4, window_bounds = array<i64: 32, 32>}, {pipeline_mode = #tpu.pipeline_mode<synchronous>, transform_indices = @transform_5, window_bounds = array<i64: 32, 32>}, {pipeline_mode = #tpu.pipeline_mode<synchronous>, transform_indices = @transform_6, window_bounds = array<i64: 32, 32>}, {pipeline_mode = #tpu.pipeline_mode<synchronous>, transform_indices = @transform_7, window_bounds = array<i64: 1, 32>}, {transform_indices = @transform_8, window_bounds = array<i64: 8, 2, 32>}, {pipeline_mode = #tpu.pipeline_mode<synchronous>, transform_indices = @transform_9, window_bounds = array<i64: 2, 32>}]} {
    %c0_i32 = arith.constant 0 : i32
    %0 = arith.cmpi eq, %arg0, %c0_i32 : i32
    %1 = arith.extui %0 : i1 to i32
    %c0_i32_0 = arith.constant 0 : i32
    %2 = arith.cmpi ne, %1, %c0_i32_0 : i32
    scf.if %2 {
      %c0_150 = arith.constant 0 : index
      %c0_151 = arith.constant 0 : index
      %292 = vector.load %arg4[%c0_150, %c0_151] : memref<2x32xf32, #tpu.memory_space<vmem>>, vector<2x32xf32>
      %c0_152 = arith.constant 0 : index
      %c0_153 = arith.constant 0 : index
      %293 = vector.load %arg11[%c0_152, %c0_153] : memref<2x32xf32, #tpu.memory_space<vmem>>, vector<2x32xf32>
      tpu.vector_store %arg11[%c0_152, %c0_153], %292 {strides = array<i32>} : memref<2x32xf32, #tpu.memory_space<vmem>>, vector<2x32xf32>,
    } else {
    }
    %c0 = arith.constant 0 : index
    %c0_1 = arith.constant 0 : index
    %3 = vector.load %arg5[%c0, %c0_1] : memref<32x32xbf16, #tpu.memory_space<vmem>>, vector<32x32xbf16>
    %c0_2 = arith.constant 0 : index
    %c0_3 = arith.constant 0 : index
    %4 = vector.load %arg6[%c0_2, %c0_3] : memref<32x32xbf16, #tpu.memory_space<vmem>>, vector<32x32xbf16>
    %c0_4 = arith.constant 0 : index
    %c0_5 = arith.constant 0 : index
    %5 = vector.load %arg7[%c0_4, %c0_5] : memref<32x32xbf16, #tpu.memory_space<vmem>>, vector<32x32xbf16>
    %c0_6 = arith.constant 0 : index
    %c0_7 = arith.constant 0 : index
    %6 = vector.load %arg8[%c0_6, %c0_7] : memref<1x32xf32, #tpu.memory_space<vmem>>, vector<1x32xf32>
    %c0_8 = arith.constant 0 : index
    %c0_9 = arith.constant 0 : index
    %7 = vector.load %arg11[%c0_8, %c0_9] : memref<2x32xf32, #tpu.memory_space<vmem>>, vector<2x32xf32>
    %8 = arith.truncf %7 : vector<2x32xf32> to vector<2x32xbf16>
    %cst = arith.constant dense<0.000000e+00> : vector<2x32xf32>
    %9 = tpu.matmul %8, %3, %cst {dimension_numbers = #tpu.dot_dimension_numbers<[1], [0], [0], [1], [0, 0, 1, 1], [], []>} : vector<2x32xbf16>, vector<32x32xbf16>, vector<2x32xf32> -> vector<2x32xf32>
    %cst_10 = arith.constant dense<0.000000e+00> : vector<2x32xf32>
    %10 = tpu.matmul %8, %4, %cst_10 {dimension_numbers = #tpu.dot_dimension_numbers<[1], [0], [0], [1], [0, 0, 1, 1], [], []>} : vector<2x32xbf16>, vector<32x32xbf16>, vector<2x32xf32> -> vector<2x32xf32>
    %cst_11 = arith.constant dense<0.000000e+00> : vector<2x32xf32>
    %11 = tpu.matmul %8, %5, %cst_11 {dimension_numbers = #tpu.dot_dimension_numbers<[1], [0], [0], [1], [0, 0, 1, 1], [], []>} : vector<2x32xbf16>, vector<32x32xbf16>, vector<2x32xf32> -> vector<2x32xf32>
    %12 = vector.broadcast %6 : vector<1x32xf32> to vector<2x32xf32>
    %13 = arith.addf %11, %12 : vector<2x32xf32>
    %c0_12 = arith.constant 0 : index
    %c0_13 = arith.constant 0 : index
    %c0_14 = arith.constant 0 : index
    %14 = vector.load %arg1[%c0_12, %c0_13, %c0_14] : memref<8x2x32xf32, #tpu.memory_space<vmem>>, vector<1x2x32xf32>
    %15 = vector.shape_cast %14 : vector<1x2x32xf32> to vector<2x32xf32>
    %16 = arith.addf %15, %9 : vector<2x32xf32>
    %17 = arith.negf %16 : vector<2x32xf32>
    %18 = math.exp %17 : vector<2x32xf32>
    %cst_15 = arith.constant 1.000000e+00 : f32
    %19 = vector.broadcast %cst_15 : f32 to vector<2x32xf32>
    %20 = arith.addf %19, %18 : vector<2x32xf32>
    %21 = arith.divf %19, %20 : vector<2x32xf32>
    %c0_16 = arith.constant 0 : index
    %c0_17 = arith.constant 0 : index
    %c0_18 = arith.constant 0 : index
    %22 = vector.load %arg2[%c0_16, %c0_17, %c0_18] : memref<8x2x32xf32, #tpu.memory_space<vmem>>, vector<1x2x32xf32>
    %23 = vector.shape_cast %22 : vector<1x2x32xf32> to vector<2x32xf32>
    %24 = arith.addf %23, %10 : vector<2x32xf32>
    %25 = arith.negf %24 : vector<2x32xf32>
    %26 = math.exp %25 : vector<2x32xf32>
    %cst_19 = arith.constant 1.000000e+00 : f32
    %27 = vector.broadcast %cst_19 : f32 to vector<2x32xf32>
    %28 = arith.addf %27, %26 : vector<2x32xf32>
    %29 = arith.divf %27, %28 : vector<2x32xf32>
    %c0_20 = arith.constant 0 : index
    %c0_21 = arith.constant 0 : index
    %c0_22 = arith.constant 0 : index
    %30 = vector.load %arg3[%c0_20, %c0_21, %c0_22] : memref<8x2x32xf32, #tpu.memory_space<vmem>>, vector<1x2x32xf32>
    %31 = vector.shape_cast %30 : vector<1x2x32xf32> to vector<2x32xf32>
    %32 = arith.mulf %21, %13 : vector<2x32xf32>
    %33 = arith.addf %31, %32 : vector<2x32xf32>
    %34 = math.tanh %33 : vector<2x32xf32>
    %cst_23 = arith.constant 1.000000e+00 : f32
    %35 = vector.broadcast %cst_23 : f32 to vector<2x32xf32>
    %36 = arith.subf %35, %29 : vector<2x32xf32>
    %37 = arith.mulf %36, %34 : vector<2x32xf32>
    %38 = arith.mulf %29, %7 : vector<2x32xf32>
    %39 = arith.addf %37, %38 : vector<2x32xf32>
    %c0_24 = arith.constant 0 : index
    %c0_25 = arith.constant 0 : index
    %c0_26 = arith.constant 0 : index
    %40 = vector.load %arg9[%c0_24, %c0_25, %c0_26] : memref<8x2x32xf32, #tpu.memory_space<vmem>>, vector<1x2x32xf32>
    %41 = vector.shape_cast %40 : vector<1x2x32xf32> to vector<2x32xf32>
    %42 = vector.shape_cast %39 : vector<2x32xf32> to vector<1x2x32xf32>
    tpu.vector_store %arg9[%c0_24, %c0_25, %c0_26], %42 {strides = array<i32>} : memref<8x2x32xf32, #tpu.memory_space<vmem>>, vector<1x2x32xf32>,
    %43 = arith.truncf %39 : vector<2x32xf32> to vector<2x32xbf16>
    %cst_27 = arith.constant dense<0.000000e+00> : vector<2x32xf32>
    %44 = tpu.matmul %43, %3, %cst_27 {dimension_numbers = #tpu.dot_dimension_numbers<[1], [0], [0], [1], [0, 0, 1, 1], [], []>} : vector<2x32xbf16>, vector<32x32xbf16>, vector<2x32xf32> -> vector<2x32xf32>
    %cst_28 = arith.constant dense<0.000000e+00> : vector<2x32xf32>
    %45 = tpu.matmul %43, %4, %cst_28 {dimension_numbers = #tpu.dot_dimension_numbers<[1], [0], [0], [1], [0, 0, 1, 1], [], []>} : vector<2x32xbf16>, vector<32x32xbf16>, vector<2x32xf32> -> vector<2x32xf32>
    %cst_29 = arith.constant dense<0.000000e+00> : vector<2x32xf32>
    %46 = tpu.matmul %43, %5, %cst_29 {dimension_numbers = #tpu.dot_dimension_numbers<[1], [0], [0], [1], [0, 0, 1, 1], [], []>} : vector<2x32xbf16>, vector<32x32xbf16>, vector<2x32xf32> -> vector<2x32xf32>
    %47 = vector.broadcast %6 : vector<1x32xf32> to vector<2x32xf32>
    %48 = arith.addf %46, %47 : vector<2x32xf32>
    %c1 = arith.constant 1 : index
    %c0_30 = arith.constant 0 : index
    %c0_31 = arith.constant 0 : index
    %49 = vector.load %arg1[%c1, %c0_30, %c0_31] : memref<8x2x32xf32, #tpu.memory_space<vmem>>, vector<1x2x32xf32>
    %50 = vector.shape_cast %49 : vector<1x2x32xf32> to vector<2x32xf32>
    %51 = arith.addf %50, %44 : vector<2x32xf32>
    %52 = arith.negf %51 : vector<2x32xf32>
    %53 = math.exp %52 : vector<2x32xf32>
    %cst_32 = arith.constant 1.000000e+00 : f32
    %54 = vector.broadcast %cst_32 : f32 to vector<2x32xf32>
    %55 = arith.addf %54, %53 : vector<2x32xf32>
    %56 = arith.divf %54, %55 : vector<2x32xf32>
    %c1_33 = arith.constant 1 : index
    %c0_34 = arith.constant 0 : index
    %c0_35 = arith.constant 0 : index
    %57 = vector.load %arg2[%c1_33, %c0_34, %c0_35] : memref<8x2x32xf32, #tpu.memory_space<vmem>>, vector<1x2x32xf32>
    %58 = vector.shape_cast %57 : vector<1x2x32xf32> to vector<2x32xf32>
    %59 = arith.addf %58, %45 : vector<2x32xf32>
    %60 = arith.negf %59 : vector<2x32xf32>
    %61 = math.exp %60 : vector<2x32xf32>
    %cst_36 = arith.constant 1.000000e+00 : f32
    %62 = vector.broadcast %cst_36 : f32 to vector<2x32xf32>
    %63 = arith.addf %62, %61 : vector<2x32xf32>
    %64 = arith.divf %62, %63 : vector<2x32xf32>
    %c1_37 = arith.constant 1 : index
    %c0_38 = arith.constant 0 : index
    %c0_39 = arith.constant 0 : index
    %65 = vector.load %arg3[%c1_37, %c0_38, %c0_39] : memref<8x2x32xf32, #tpu.memory_space<vmem>>, vector<1x2x32xf32>
    %66 = vector.shape_cast %65 : vector<1x2x32xf32> to vector<2x32xf32>
    %67 = arith.mulf %56, %48 : vector<2x32xf32>
    %68 = arith.addf %66, %67 : vector<2x32xf32>
    %69 = math.tanh %68 : vector<2x32xf32>
    %cst_40 = arith.constant 1.000000e+00 : f32
    %70 = vector.broadcast %cst_40 : f32 to vector<2x32xf32>
    %71 = arith.subf %70, %64 : vector<2x32xf32>
    %72 = arith.mulf %71, %69 : vector<2x32xf32>
    %73 = arith.mulf %64, %39 : vector<2x32xf32>
    %74 = arith.addf %72, %73 : vector<2x32xf32>
    %c1_41 = arith.constant 1 : index
    %c0_42 = arith.constant 0 : index
    %c0_43 = arith.constant 0 : index
    %75 = vector.load %arg9[%c1_41, %c0_42, %c0_43] : memref<8x2x32xf32, #tpu.memory_space<vmem>>, vector<1x2x32xf32>
    %76 = vector.shape_cast %75 : vector<1x2x32xf32> to vector<2x32xf32>
    %77 = vector.shape_cast %74 : vector<2x32xf32> to vector<1x2x32xf32>
    tpu.vector_store %arg9[%c1_41, %c0_42, %c0_43], %77 {strides = array<i32>} : memref<8x2x32xf32, #tpu.memory_space<vmem>>, vector<1x2x32xf32>,
    %78 = arith.truncf %74 : vector<2x32xf32> to vector<2x32xbf16>
    %cst_44 = arith.constant dense<0.000000e+00> : vector<2x32xf32>
    %79 = tpu.matmul %78, %3, %cst_44 {dimension_numbers = #tpu.dot_dimension_numbers<[1], [0], [0], [1], [0, 0, 1, 1], [], []>} : vector<2x32xbf16>, vector<32x32xbf16>, vector<2x32xf32> -> vector<2x32xf32>
    %cst_45 = arith.constant dense<0.000000e+00> : vector<2x32xf32>
    %80 = tpu.matmul %78, %4, %cst_45 {dimension_numbers = #tpu.dot_dimension_numbers<[1], [0], [0], [1], [0, 0, 1, 1], [], []>} : vector<2x32xbf16>, vector<32x32xbf16>, vector<2x32xf32> -> vector<2x32xf32>
    %cst_46 = arith.constant dense<0.000000e+00> : vector<2x32xf32>
    %81 = tpu.matmul %78, %5, %cst_46 {dimension_numbers = #tpu.dot_dimension_numbers<[1], [0], [0], [1], [0, 0, 1, 1], [], []>} : vector<2x32xbf16>, vector<32x32xbf16>, vector<2x32xf32> -> vector<2x32xf32>
    %82 = vector.broadcast %6 : vector<1x32xf32> to vector<2x32xf32>
    %83 = arith.addf %81, %82 : vector<2x32xf32>
    %c2 = arith.constant 2 : index
    %c0_47 = arith.constant 0 : index
    %c0_48 = arith.constant 0 : index
    %84 = vector.load %arg1[%c2, %c0_47, %c0_48] : memref<8x2x32xf32, #tpu.memory_space<vmem>>, vector<1x2x32xf32>
    %85 = vector.shape_cast %84 : vector<1x2x32xf32> to vector<2x32xf32>
    %86 = arith.addf %85, %79 : vector<2x32xf32>
    %87 = arith.negf %86 : vector<2x32xf32>
    %88 = math.exp %87 : vector<2x32xf32>
    %cst_49 = arith.constant 1.000000e+00 : f32
    %89 = vector.broadcast %cst_49 : f32 to vector<2x32xf32>
    %90 = arith.addf %89, %88 : vector<2x32xf32>
    %91 = arith.divf %89, %90 : vector<2x32xf32>
    %c2_50 = arith.constant 2 : index
    %c0_51 = arith.constant 0 : index
    %c0_52 = arith.constant 0 : index
    %92 = vector.load %arg2[%c2_50, %c0_51, %c0_52] : memref<8x2x32xf32, #tpu.memory_space<vmem>>, vector<1x2x32xf32>
    %93 = vector.shape_cast %92 : vector<1x2x32xf32> to vector<2x32xf32>
    %94 = arith.addf %93, %80 : vector<2x32xf32>
    %95 = arith.negf %94 : vector<2x32xf32>
    %96 = math.exp %95 : vector<2x32xf32>
    %cst_53 = arith.constant 1.000000e+00 : f32
    %97 = vector.broadcast %cst_53 : f32 to vector<2x32xf32>
    %98 = arith.addf %97, %96 : vector<2x32xf32>
    %99 = arith.divf %97, %98 : vector<2x32xf32>
    %c2_54 = arith.constant 2 : index
    %c0_55 = arith.constant 0 : index
    %c0_56 = arith.constant 0 : index
    %100 = vector.load %arg3[%c2_54, %c0_55, %c0_56] : memref<8x2x32xf32, #tpu.memory_space<vmem>>, vector<1x2x32xf32>
    %101 = vector.shape_cast %100 : vector<1x2x32xf32> to vector<2x32xf32>
    %102 = arith.mulf %91, %83 : vector<2x32xf32>
    %103 = arith.addf %101, %102 : vector<2x32xf32>
    %104 = math.tanh %103 : vector<2x32xf32>
    %cst_57 = arith.constant 1.000000e+00 : f32
    %105 = vector.broadcast %cst_57 : f32 to vector<2x32xf32>
    %106 = arith.subf %105, %99 : vector<2x32xf32>
    %107 = arith.mulf %106, %104 : vector<2x32xf32>
    %108 = arith.mulf %99, %74 : vector<2x32xf32>
    %109 = arith.addf %107, %108 : vector<2x32xf32>
    %c2_58 = arith.constant 2 : index
    %c0_59 = arith.constant 0 : index
    %c0_60 = arith.constant 0 : index
    %110 = vector.load %arg9[%c2_58, %c0_59, %c0_60] : memref<8x2x32xf32, #tpu.memory_space<vmem>>, vector<1x2x32xf32>
    %111 = vector.shape_cast %110 : vector<1x2x32xf32> to vector<2x32xf32>
    %112 = vector.shape_cast %109 : vector<2x32xf32> to vector<1x2x32xf32>
    tpu.vector_store %arg9[%c2_58, %c0_59, %c0_60], %112 {strides = array<i32>} : memref<8x2x32xf32, #tpu.memory_space<vmem>>, vector<1x2x32xf32>,
    %113 = arith.truncf %109 : vector<2x32xf32> to vector<2x32xbf16>
    %cst_61 = arith.constant dense<0.000000e+00> : vector<2x32xf32>
    %114 = tpu.matmul %113, %3, %cst_61 {dimension_numbers = #tpu.dot_dimension_numbers<[1], [0], [0], [1], [0, 0, 1, 1], [], []>} : vector<2x32xbf16>, vector<32x32xbf16>, vector<2x32xf32> -> vector<2x32xf32>
    %cst_62 = arith.constant dense<0.000000e+00> : vector<2x32xf32>
    %115 = tpu.matmul %113, %4, %cst_62 {dimension_numbers = #tpu.dot_dimension_numbers<[1], [0], [0], [1], [0, 0, 1, 1], [], []>} : vector<2x32xbf16>, vector<32x32xbf16>, vector<2x32xf32> -> vector<2x32xf32>
    %cst_63 = arith.constant dense<0.000000e+00> : vector<2x32xf32>
    %116 = tpu.matmul %113, %5, %cst_63 {dimension_numbers = #tpu.dot_dimension_numbers<[1], [0], [0], [1], [0, 0, 1, 1], [], []>} : vector<2x32xbf16>, vector<32x32xbf16>, vector<2x32xf32> -> vector<2x32xf32>
    %117 = vector.broadcast %6 : vector<1x32xf32> to vector<2x32xf32>
    %118 = arith.addf %116, %117 : vector<2x32xf32>
    %c3 = arith.constant 3 : index
    %c0_64 = arith.constant 0 : index
    %c0_65 = arith.constant 0 : index
    %119 = vector.load %arg1[%c3, %c0_64, %c0_65] : memref<8x2x32xf32, #tpu.memory_space<vmem>>, vector<1x2x32xf32>
    %120 = vector.shape_cast %119 : vector<1x2x32xf32> to vector<2x32xf32>
    %121 = arith.addf %120, %114 : vector<2x32xf32>
    %122 = arith.negf %121 : vector<2x32xf32>
    %123 = math.exp %122 : vector<2x32xf32>
    %cst_66 = arith.constant 1.000000e+00 : f32
    %124 = vector.broadcast %cst_66 : f32 to vector<2x32xf32>
    %125 = arith.addf %124, %123 : vector<2x32xf32>
    %126 = arith.divf %124, %125 : vector<2x32xf32>
    %c3_67 = arith.constant 3 : index
    %c0_68 = arith.constant 0 : index
    %c0_69 = arith.constant 0 : index
    %127 = vector.load %arg2[%c3_67, %c0_68, %c0_69] : memref<8x2x32xf32, #tpu.memory_space<vmem>>, vector<1x2x32xf32>
    %128 = vector.shape_cast %127 : vector<1x2x32xf32> to vector<2x32xf32>
    %129 = arith.addf %128, %115 : vector<2x32xf32>
    %130 = arith.negf %129 : vector<2x32xf32>
    %131 = math.exp %130 : vector<2x32xf32>
    %cst_70 = arith.constant 1.000000e+00 : f32
    %132 = vector.broadcast %cst_70 : f32 to vector<2x32xf32>
    %133 = arith.addf %132, %131 : vector<2x32xf32>
    %134 = arith.divf %132, %133 : vector<2x32xf32>
    %c3_71 = arith.constant 3 : index
    %c0_72 = arith.constant 0 : index
    %c0_73 = arith.constant 0 : index
    %135 = vector.load %arg3[%c3_71, %c0_72, %c0_73] : memref<8x2x32xf32, #tpu.memory_space<vmem>>, vector<1x2x32xf32>
    %136 = vector.shape_cast %135 : vector<1x2x32xf32> to vector<2x32xf32>
    %137 = arith.mulf %126, %118 : vector<2x32xf32>
    %138 = arith.addf %136, %137 : vector<2x32xf32>
    %139 = math.tanh %138 : vector<2x32xf32>
    %cst_74 = arith.constant 1.000000e+00 : f32
    %140 = vector.broadcast %cst_74 : f32 to vector<2x32xf32>
    %141 = arith.subf %140, %134 : vector<2x32xf32>
    %142 = arith.mulf %141, %139 : vector<2x32xf32>
    %143 = arith.mulf %134, %109 : vector<2x32xf32>
    %144 = arith.addf %142, %143 : vector<2x32xf32>
    %c3_75 = arith.constant 3 : index
    %c0_76 = arith.constant 0 : index
    %c0_77 = arith.constant 0 : index
    %145 = vector.load %arg9[%c3_75, %c0_76, %c0_77] : memref<8x2x32xf32, #tpu.memory_space<vmem>>, vector<1x2x32xf32>
    %146 = vector.shape_cast %145 : vector<1x2x32xf32> to vector<2x32xf32>
    %147 = vector.shape_cast %144 : vector<2x32xf32> to vector<1x2x32xf32>
    tpu.vector_store %arg9[%c3_75, %c0_76, %c0_77], %147 {strides = array<i32>} : memref<8x2x32xf32, #tpu.memory_space<vmem>>, vector<1x2x32xf32>,
    %148 = arith.truncf %144 : vector<2x32xf32> to vector<2x32xbf16>
    %cst_78 = arith.constant dense<0.000000e+00> : vector<2x32xf32>
    %149 = tpu.matmul %148, %3, %cst_78 {dimension_numbers = #tpu.dot_dimension_numbers<[1], [0], [0], [1], [0, 0, 1, 1], [], []>} : vector<2x32xbf16>, vector<32x32xbf16>, vector<2x32xf32> -> vector<2x32xf32>
    %cst_79 = arith.constant dense<0.000000e+00> : vector<2x32xf32>
    %150 = tpu.matmul %148, %4, %cst_79 {dimension_numbers = #tpu.dot_dimension_numbers<[1], [0], [0], [1], [0, 0, 1, 1], [], []>} : vector<2x32xbf16>, vector<32x32xbf16>, vector<2x32xf32> -> vector<2x32xf32>
    %cst_80 = arith.constant dense<0.000000e+00> : vector<2x32xf32>
    %151 = tpu.matmul %148, %5, %cst_80 {dimension_numbers = #tpu.dot_dimension_numbers<[1], [0], [0], [1], [0, 0, 1, 1], [], []>} : vector<2x32xbf16>, vector<32x32xbf16>, vector<2x32xf32> -> vector<2x32xf32>
    %152 = vector.broadcast %6 : vector<1x32xf32> to vector<2x32xf32>
    %153 = arith.addf %151, %152 : vector<2x32xf32>
    %c4 = arith.constant 4 : index
    %c0_81 = arith.constant 0 : index
    %c0_82 = arith.constant 0 : index
    %154 = vector.load %arg1[%c4, %c0_81, %c0_82] : memref<8x2x32xf32, #tpu.memory_space<vmem>>, vector<1x2x32xf32>
    %155 = vector.shape_cast %154 : vector<1x2x32xf32> to vector<2x32xf32>
    %156 = arith.addf %155, %149 : vector<2x32xf32>
    %157 = arith.negf %156 : vector<2x32xf32>
    %158 = math.exp %157 : vector<2x32xf32>
    %cst_83 = arith.constant 1.000000e+00 : f32
    %159 = vector.broadcast %cst_83 : f32 to vector<2x32xf32>
    %160 = arith.addf %159, %158 : vector<2x32xf32>
    %161 = arith.divf %159, %160 : vector<2x32xf32>
    %c4_84 = arith.constant 4 : index
    %c0_85 = arith.constant 0 : index
    %c0_86 = arith.constant 0 : index
    %162 = vector.load %arg2[%c4_84, %c0_85, %c0_86] : memref<8x2x32xf32, #tpu.memory_space<vmem>>, vector<1x2x32xf32>
    %163 = vector.shape_cast %162 : vector<1x2x32xf32> to vector<2x32xf32>
    %164 = arith.addf %163, %150 : vector<2x32xf32>
    %165 = arith.negf %164 : vector<2x32xf32>
    %166 = math.exp %165 : vector<2x32xf32>
    %cst_87 = arith.constant 1.000000e+00 : f32
    %167 = vector.broadcast %cst_87 : f32 to vector<2x32xf32>
    %168 = arith.addf %167, %166 : vector<2x32xf32>
    %169 = arith.divf %167, %168 : vector<2x32xf32>
    %c4_88 = arith.constant 4 : index
    %c0_89 = arith.constant 0 : index
    %c0_90 = arith.constant 0 : index
    %170 = vector.load %arg3[%c4_88, %c0_89, %c0_90] : memref<8x2x32xf32, #tpu.memory_space<vmem>>, vector<1x2x32xf32>
    %171 = vector.shape_cast %170 : vector<1x2x32xf32> to vector<2x32xf32>
    %172 = arith.mulf %161, %153 : vector<2x32xf32>
    %173 = arith.addf %171, %172 : vector<2x32xf32>
    %174 = math.tanh %173 : vector<2x32xf32>
    %cst_91 = arith.constant 1.000000e+00 : f32
    %175 = vector.broadcast %cst_91 : f32 to vector<2x32xf32>
    %176 = arith.subf %175, %169 : vector<2x32xf32>
    %177 = arith.mulf %176, %174 : vector<2x32xf32>
    %178 = arith.mulf %169, %144 : vector<2x32xf32>
    %179 = arith.addf %177, %178 : vector<2x32xf32>
    %c4_92 = arith.constant 4 : index
    %c0_93 = arith.constant 0 : index
    %c0_94 = arith.constant 0 : index
    %180 = vector.load %arg9[%c4_92, %c0_93, %c0_94] : memref<8x2x32xf32, #tpu.memory_space<vmem>>, vector<1x2x32xf32>
    %181 = vector.shape_cast %180 : vector<1x2x32xf32> to vector<2x32xf32>
    %182 = vector.shape_cast %179 : vector<2x32xf32> to vector<1x2x32xf32>
    tpu.vector_store %arg9[%c4_92, %c0_93, %c0_94], %182 {strides = array<i32>} : memref<8x2x32xf32, #tpu.memory_space<vmem>>, vector<1x2x32xf32>,
    %183 = arith.truncf %179 : vector<2x32xf32> to vector<2x32xbf16>
    %cst_95 = arith.constant dense<0.000000e+00> : vector<2x32xf32>
    %184 = tpu.matmul %183, %3, %cst_95 {dimension_numbers = #tpu.dot_dimension_numbers<[1], [0], [0], [1], [0, 0, 1, 1], [], []>} : vector<2x32xbf16>, vector<32x32xbf16>, vector<2x32xf32> -> vector<2x32xf32>
    %cst_96 = arith.constant dense<0.000000e+00> : vector<2x32xf32>
    %185 = tpu.matmul %183, %4, %cst_96 {dimension_numbers = #tpu.dot_dimension_numbers<[1], [0], [0], [1], [0, 0, 1, 1], [], []>} : vector<2x32xbf16>, vector<32x32xbf16>, vector<2x32xf32> -> vector<2x32xf32>
    %cst_97 = arith.constant dense<0.000000e+00> : vector<2x32xf32>
    %186 = tpu.matmul %183, %5, %cst_97 {dimension_numbers = #tpu.dot_dimension_numbers<[1], [0], [0], [1], [0, 0, 1, 1], [], []>} : vector<2x32xbf16>, vector<32x32xbf16>, vector<2x32xf32> -> vector<2x32xf32>
    %187 = vector.broadcast %6 : vector<1x32xf32> to vector<2x32xf32>
    %188 = arith.addf %186, %187 : vector<2x32xf32>
    %c5 = arith.constant 5 : index
    %c0_98 = arith.constant 0 : index
    %c0_99 = arith.constant 0 : index
    %189 = vector.load %arg1[%c5, %c0_98, %c0_99] : memref<8x2x32xf32, #tpu.memory_space<vmem>>, vector<1x2x32xf32>
    %190 = vector.shape_cast %189 : vector<1x2x32xf32> to vector<2x32xf32>
    %191 = arith.addf %190, %184 : vector<2x32xf32>
    %192 = arith.negf %191 : vector<2x32xf32>
    %193 = math.exp %192 : vector<2x32xf32>
    %cst_100 = arith.constant 1.000000e+00 : f32
    %194 = vector.broadcast %cst_100 : f32 to vector<2x32xf32>
    %195 = arith.addf %194, %193 : vector<2x32xf32>
    %196 = arith.divf %194, %195 : vector<2x32xf32>
    %c5_101 = arith.constant 5 : index
    %c0_102 = arith.constant 0 : index
    %c0_103 = arith.constant 0 : index
    %197 = vector.load %arg2[%c5_101, %c0_102, %c0_103] : memref<8x2x32xf32, #tpu.memory_space<vmem>>, vector<1x2x32xf32>
    %198 = vector.shape_cast %197 : vector<1x2x32xf32> to vector<2x32xf32>
    %199 = arith.addf %198, %185 : vector<2x32xf32>
    %200 = arith.negf %199 : vector<2x32xf32>
    %201 = math.exp %200 : vector<2x32xf32>
    %cst_104 = arith.constant 1.000000e+00 : f32
    %202 = vector.broadcast %cst_104 : f32 to vector<2x32xf32>
    %203 = arith.addf %202, %201 : vector<2x32xf32>
    %204 = arith.divf %202, %203 : vector<2x32xf32>
    %c5_105 = arith.constant 5 : index
    %c0_106 = arith.constant 0 : index
    %c0_107 = arith.constant 0 : index
    %205 = vector.load %arg3[%c5_105, %c0_106, %c0_107] : memref<8x2x32xf32, #tpu.memory_space<vmem>>, vector<1x2x32xf32>
    %206 = vector.shape_cast %205 : vector<1x2x32xf32> to vector<2x32xf32>
    %207 = arith.mulf %196, %188 : vector<2x32xf32>
    %208 = arith.addf %206, %207 : vector<2x32xf32>
    %209 = math.tanh %208 : vector<2x32xf32>
    %cst_108 = arith.constant 1.000000e+00 : f32
    %210 = vector.broadcast %cst_108 : f32 to vector<2x32xf32>
    %211 = arith.subf %210, %204 : vector<2x32xf32>
    %212 = arith.mulf %211, %209 : vector<2x32xf32>
    %213 = arith.mulf %204, %179 : vector<2x32xf32>
    %214 = arith.addf %212, %213 : vector<2x32xf32>
    %c5_109 = arith.constant 5 : index
    %c0_110 = arith.constant 0 : index
    %c0_111 = arith.constant 0 : index
    %215 = vector.load %arg9[%c5_109, %c0_110, %c0_111] : memref<8x2x32xf32, #tpu.memory_space<vmem>>, vector<1x2x32xf32>
    %216 = vector.shape_cast %215 : vector<1x2x32xf32> to vector<2x32xf32>
    %217 = vector.shape_cast %214 : vector<2x32xf32> to vector<1x2x32xf32>
    tpu.vector_store %arg9[%c5_109, %c0_110, %c0_111], %217 {strides = array<i32>} : memref<8x2x32xf32, #tpu.memory_space<vmem>>, vector<1x2x32xf32>,
    %218 = arith.truncf %214 : vector<2x32xf32> to vector<2x32xbf16>
    %cst_112 = arith.constant dense<0.000000e+00> : vector<2x32xf32>
    %219 = tpu.matmul %218, %3, %cst_112 {dimension_numbers = #tpu.dot_dimension_numbers<[1], [0], [0], [1], [0, 0, 1, 1], [], []>} : vector<2x32xbf16>, vector<32x32xbf16>, vector<2x32xf32> -> vector<2x32xf32>
    %cst_113 = arith.constant dense<0.000000e+00> : vector<2x32xf32>
    %220 = tpu.matmul %218, %4, %cst_113 {dimension_numbers = #tpu.dot_dimension_numbers<[1], [0], [0], [1], [0, 0, 1, 1], [], []>} : vector<2x32xbf16>, vector<32x32xbf16>, vector<2x32xf32> -> vector<2x32xf32>
    %cst_114 = arith.constant dense<0.000000e+00> : vector<2x32xf32>
    %221 = tpu.matmul %218, %5, %cst_114 {dimension_numbers = #tpu.dot_dimension_numbers<[1], [0], [0], [1], [0, 0, 1, 1], [], []>} : vector<2x32xbf16>, vector<32x32xbf16>, vector<2x32xf32> -> vector<2x32xf32>
    %222 = vector.broadcast %6 : vector<1x32xf32> to vector<2x32xf32>
    %223 = arith.addf %221, %222 : vector<2x32xf32>
    %c6 = arith.constant 6 : index
    %c0_115 = arith.constant 0 : index
    %c0_116 = arith.constant 0 : index
    %224 = vector.load %arg1[%c6, %c0_115, %c0_116] : memref<8x2x32xf32, #tpu.memory_space<vmem>>, vector<1x2x32xf32>
    %225 = vector.shape_cast %224 : vector<1x2x32xf32> to vector<2x32xf32>
    %226 = arith.addf %225, %219 : vector<2x32xf32>
    %227 = arith.negf %226 : vector<2x32xf32>
    %228 = math.exp %227 : vector<2x32xf32>
    %cst_117 = arith.constant 1.000000e+00 : f32
    %229 = vector.broadcast %cst_117 : f32 to vector<2x32xf32>
    %230 = arith.addf %229, %228 : vector<2x32xf32>
    %231 = arith.divf %229, %230 : vector<2x32xf32>
    %c6_118 = arith.constant 6 : index
    %c0_119 = arith.constant 0 : index
    %c0_120 = arith.constant 0 : index
    %232 = vector.load %arg2[%c6_118, %c0_119, %c0_120] : memref<8x2x32xf32, #tpu.memory_space<vmem>>, vector<1x2x32xf32>
    %233 = vector.shape_cast %232 : vector<1x2x32xf32> to vector<2x32xf32>
    %234 = arith.addf %233, %220 : vector<2x32xf32>
    %235 = arith.negf %234 : vector<2x32xf32>
    %236 = math.exp %235 : vector<2x32xf32>
    %cst_121 = arith.constant 1.000000e+00 : f32
    %237 = vector.broadcast %cst_121 : f32 to vector<2x32xf32>
    %238 = arith.addf %237, %236 : vector<2x32xf32>
    %239 = arith.divf %237, %238 : vector<2x32xf32>
    %c6_122 = arith.constant 6 : index
    %c0_123 = arith.constant 0 : index
    %c0_124 = arith.constant 0 : index
    %240 = vector.load %arg3[%c6_122, %c0_123, %c0_124] : memref<8x2x32xf32, #tpu.memory_space<vmem>>, vector<1x2x32xf32>
    %241 = vector.shape_cast %240 : vector<1x2x32xf32> to vector<2x32xf32>
    %242 = arith.mulf %231, %223 : vector<2x32xf32>
    %243 = arith.addf %241, %242 : vector<2x32xf32>
    %244 = math.tanh %243 : vector<2x32xf32>
    %cst_125 = arith.constant 1.000000e+00 : f32
    %245 = vector.broadcast %cst_125 : f32 to vector<2x32xf32>
    %246 = arith.subf %245, %239 : vector<2x32xf32>
    %247 = arith.mulf %246, %244 : vector<2x32xf32>
    %248 = arith.mulf %239, %214 : vector<2x32xf32>
    %249 = arith.addf %247, %248 : vector<2x32xf32>
    %c6_126 = arith.constant 6 : index
    %c0_127 = arith.constant 0 : index
    %c0_128 = arith.constant 0 : index
    %250 = vector.load %arg9[%c6_126, %c0_127, %c0_128] : memref<8x2x32xf32, #tpu.memory_space<vmem>>, vector<1x2x32xf32>
    %251 = vector.shape_cast %250 : vector<1x2x32xf32> to vector<2x32xf32>
    %252 = vector.shape_cast %249 : vector<2x32xf32> to vector<1x2x32xf32>
    tpu.vector_store %arg9[%c6_126, %c0_127, %c0_128], %252 {strides = array<i32>} : memref<8x2x32xf32, #tpu.memory_space<vmem>>, vector<1x2x32xf32>,
    %253 = arith.truncf %249 : vector<2x32xf32> to vector<2x32xbf16>
    %cst_129 = arith.constant dense<0.000000e+00> : vector<2x32xf32>
    %254 = tpu.matmul %253, %3, %cst_129 {dimension_numbers = #tpu.dot_dimension_numbers<[1], [0], [0], [1], [0, 0, 1, 1], [], []>} : vector<2x32xbf16>, vector<32x32xbf16>, vector<2x32xf32> -> vector<2x32xf32>
    %cst_130 = arith.constant dense<0.000000e+00> : vector<2x32xf32>
    %255 = tpu.matmul %253, %4, %cst_130 {dimension_numbers = #tpu.dot_dimension_numbers<[1], [0], [0], [1], [0, 0, 1, 1], [], []>} : vector<2x32xbf16>, vector<32x32xbf16>, vector<2x32xf32> -> vector<2x32xf32>
    %cst_131 = arith.constant dense<0.000000e+00> : vector<2x32xf32>
    %256 = tpu.matmul %253, %5, %cst_131 {dimension_numbers = #tpu.dot_dimension_numbers<[1], [0], [0], [1], [0, 0, 1, 1], [], []>} : vector<2x32xbf16>, vector<32x32xbf16>, vector<2x32xf32> -> vector<2x32xf32>
    %257 = vector.broadcast %6 : vector<1x32xf32> to vector<2x32xf32>
    %258 = arith.addf %256, %257 : vector<2x32xf32>
    %c7 = arith.constant 7 : index
    %c0_132 = arith.constant 0 : index
    %c0_133 = arith.constant 0 : index
    %259 = vector.load %arg1[%c7, %c0_132, %c0_133] : memref<8x2x32xf32, #tpu.memory_space<vmem>>, vector<1x2x32xf32>
    %260 = vector.shape_cast %259 : vector<1x2x32xf32> to vector<2x32xf32>
    %261 = arith.addf %260, %254 : vector<2x32xf32>
    %262 = arith.negf %261 : vector<2x32xf32>
    %263 = math.exp %262 : vector<2x32xf32>
    %cst_134 = arith.constant 1.000000e+00 : f32
    %264 = vector.broadcast %cst_134 : f32 to vector<2x32xf32>
    %265 = arith.addf %264, %263 : vector<2x32xf32>
    %266 = arith.divf %264, %265 : vector<2x32xf32>
    %c7_135 = arith.constant 7 : index
    %c0_136 = arith.constant 0 : index
    %c0_137 = arith.constant 0 : index
    %267 = vector.load %arg2[%c7_135, %c0_136, %c0_137] : memref<8x2x32xf32, #tpu.memory_space<vmem>>, vector<1x2x32xf32>
    %268 = vector.shape_cast %267 : vector<1x2x32xf32> to vector<2x32xf32>
    %269 = arith.addf %268, %255 : vector<2x32xf32>
    %270 = arith.negf %269 : vector<2x32xf32>
    %271 = math.exp %270 : vector<2x32xf32>
    %cst_138 = arith.constant 1.000000e+00 : f32
    %272 = vector.broadcast %cst_138 : f32 to vector<2x32xf32>
    %273 = arith.addf %272, %271 : vector<2x32xf32>
    %274 = arith.divf %272, %273 : vector<2x32xf32>
    %c7_139 = arith.constant 7 : index
    %c0_140 = arith.constant 0 : index
    %c0_141 = arith.constant 0 : index
    %275 = vector.load %arg3[%c7_139, %c0_140, %c0_141] : memref<8x2x32xf32, #tpu.memory_space<vmem>>, vector<1x2x32xf32>
    %276 = vector.shape_cast %275 : vector<1x2x32xf32> to vector<2x32xf32>
    %277 = arith.mulf %266, %258 : vector<2x32xf32>
    %278 = arith.addf %276, %277 : vector<2x32xf32>
    %279 = math.tanh %278 : vector<2x32xf32>
    %cst_142 = arith.constant 1.000000e+00 : f32
    %280 = vector.broadcast %cst_142 : f32 to vector<2x32xf32>
    %281 = arith.subf %280, %274 : vector<2x32xf32>
    %282 = arith.mulf %281, %279 : vector<2x32xf32>
    %283 = arith.mulf %274, %249 : vector<2x32xf32>
    %284 = arith.addf %282, %283 : vector<2x32xf32>
    %c7_143 = arith.constant 7 : index
    %c0_144 = arith.constant 0 : index
    %c0_145 = arith.constant 0 : index
    %285 = vector.load %arg9[%c7_143, %c0_144, %c0_145] : memref<8x2x32xf32, #tpu.memory_space<vmem>>, vector<1x2x32xf32>
    %286 = vector.shape_cast %285 : vector<1x2x32xf32> to vector<2x32xf32>
    %287 = vector.shape_cast %284 : vector<2x32xf32> to vector<1x2x32xf32>
    tpu.vector_store %arg9[%c7_143, %c0_144, %c0_145], %287 {strides = array<i32>} : memref<8x2x32xf32, #tpu.memory_space<vmem>>, vector<1x2x32xf32>,
    %c0_146 = arith.constant 0 : index
    %c0_147 = arith.constant 0 : index
    %288 = vector.load %arg11[%c0_146, %c0_147] : memref<2x32xf32, #tpu.memory_space<vmem>>, vector<2x32xf32>
    tpu.vector_store %arg11[%c0_146, %c0_147], %284 {strides = array<i32>} : memref<2x32xf32, #tpu.memory_space<vmem>>, vector<2x32xf32>,
    %c0_i32_148 = arith.constant 0 : i32
    %289 = arith.cmpi eq, %arg0, %c0_i32_148 : i32
    %290 = arith.extui %289 : i1 to i32
    %c0_i32_149 = arith.constant 0 : i32
    %291 = arith.cmpi ne, %290, %c0_i32_149 : i32
    scf.if %291 {
      %c0_150 = arith.constant 0 : index
      %c0_151 = arith.constant 0 : index
      %292 = vector.load %arg10[%c0_150, %c0_151] : memref<2x32xf32, #tpu.memory_space<vmem>>, vector<2x32xf32>
      tpu.vector_store %arg10[%c0_150, %c0_151], %284 {strides = array<i32>} : memref<2x32xf32, #tpu.memory_space<vmem>>, vector<2x32xf32>,
    } else {
    }
    return
  }
  func.func @transform_0(%arg0: i32) -> (i32, i32, i32) {
    %c0_i32 = arith.constant 0 : i32
    %c0_i32_0 = arith.constant 0 : i32
    %c0_i32_1 = arith.constant 0 : i32
    return %arg0, %c0_i32, %c0_i32_0 : i32, i32, i32
  }
  func.func @transform_1(%arg0: i32) -> (i32, i32, i32) {
    %c0_i32 = arith.constant 0 : i32
    %c0_i32_0 = arith.constant 0 : i32
    %c0_i32_1 = arith.constant 0 : i32
    return %arg0, %c0_i32, %c0_i32_0 : i32, i32, i32
  }
  func.func @transform_2(%arg0: i32) -> (i32, i32, i32) {
    %c0_i32 = arith.constant 0 : i32
    %c0_i32_0 = arith.constant 0 : i32
    %c0_i32_1 = arith.constant 0 : i32
    return %arg0, %c0_i32, %c0_i32_0 : i32, i32, i32
  }
  func.func @transform_3(%arg0: i32) -> (i32, i32) {
    %c0_i32 = arith.constant 0 : i32
    %c0_i32_0 = arith.constant 0 : i32
    %c0_i32_1 = arith.constant 0 : i32
    return %c0_i32, %c0_i32_0 : i32, i32
  }
  func.func @transform_4(%arg0: i32) -> (i32, i32) {
    %c0_i32 = arith.constant 0 : i32
    %c0_i32_0 = arith.constant 0 : i32
    %c0_i32_1 = arith.constant 0 : i32
    return %c0_i32, %c0_i32_0 : i32, i32
  }
  func.func @transform_5(%arg0: i32) -> (i32, i32) {
    %c0_i32 = arith.constant 0 : i32
    %c0_i32_0 = arith.constant 0 : i32
    %c0_i32_1 = arith.constant 0 : i32
    return %c0_i32, %c0_i32_0 : i32, i32
  }
  func.func @transform_6(%arg0: i32) -> (i32, i32) {
    %c0_i32 = arith.constant 0 : i32
    %c0_i32_0 = arith.constant 0 : i32
    %c0_i32_1 = arith.constant 0 : i32
    return %c0_i32, %c0_i32_0 : i32, i32
  }
  func.func @transform_7(%arg0: i32) -> (i32, i32) {
    %c0_i32 = arith.constant 0 : i32
    %c0_i32_0 = arith.constant 0 : i32
    %c0_i32_1 = arith.constant 0 : i32
    return %c0_i32, %c0_i32_0 : i32, i32
  }
  func.func @transform_8(%arg0: i32) -> (i32, i32, i32) {
    %c0_i32 = arith.constant 0 : i32
    %c0_i32_0 = arith.constant 0 : i32
    %c0_i32_1 = arith.constant 0 : i32
    return %arg0, %c0_i32, %c0_i32_0 : i32, i32, i32
  }
  func.func @transform_9(%arg0: i32) -> (i32, i32) {
    %c0_i32 = arith.constant 0 : i32
    %c0_i32_0 = arith.constant 0 : i32
    %c0_i32_1 = arith.constant 0 : i32
    return %c0_i32, %c0_i32_0 : i32, i32
  }
}

module attributes {stable_mosaic.version = 11 : i64} {
  func.func @_epilogue_kernel(%arg0: i32, %arg1: memref<8x2x32xf32, #tpu.memory_space<vmem>>, %arg2: memref<8x2x32xf32, #tpu.memory_space<vmem>>, %arg3: memref<1x1x32xf32, #tpu.memory_space<vmem>>, %arg4: memref<1x1x32xf32, #tpu.memory_space<vmem>>, %arg5: memref<4x2x32xf32, #tpu.memory_space<vmem>>) attributes {dimension_semantics = [#tpu.dimension_semantics<parallel>], iteration_bounds = array<i64: 1>, scalar_prefetch = 0 : i64, scratch_operands = 0 : i64, tpu.core_type = #tpu.core_type<tc>, window_params = [{transform_indices = @transform_0, window_bounds = array<i64: 8, 2, 32>}, {transform_indices = @transform_1, window_bounds = array<i64: 8, 2, 32>}, {pipeline_mode = #tpu.pipeline_mode<synchronous>, transform_indices = @transform_2, window_bounds = array<i64: 1, 1, 32>}, {pipeline_mode = #tpu.pipeline_mode<synchronous>, transform_indices = @transform_3, window_bounds = array<i64: 1, 1, 32>}, {transform_indices = @transform_4, window_bounds = array<i64: 4, 2, 32>}]} {
    %c0 = arith.constant 0 : index
    %c0_0 = arith.constant 0 : index
    %c0_1 = arith.constant 0 : index
    %0 = vector.load %arg1[%c0, %c0_0, %c0_1] : memref<8x2x32xf32, #tpu.memory_space<vmem>>, vector<8x2x32xf32>
    %c0_2 = arith.constant 0 : index
    %c0_3 = arith.constant 0 : index
    %c0_4 = arith.constant 0 : index
    %1 = vector.load %arg2[%c0_2, %c0_3, %c0_4] : memref<8x2x32xf32, #tpu.memory_space<vmem>>, vector<8x2x32xf32>
    %2 = arith.addf %0, %1 : vector<8x2x32xf32>
    %cst = arith.constant dense<0.000000e+00> : vector<8x2xf32>
    %3 = vector.multi_reduction <add>, %2, %cst [2] : vector<8x2x32xf32> to vector<8x2xf32>
    %4 = vector.shape_cast %3 : vector<8x2xf32> to vector<8x2x1xf32>
    %cst_5 = arith.constant 3.200000e+01 : f32
    %5 = vector.broadcast %cst_5 : f32 to vector<8x2x1xf32>
    %6 = arith.divf %4, %5 : vector<8x2x1xf32>
    %7 = vector.broadcast %6 : vector<8x2x1xf32> to vector<8x2x32xf32>
    %8 = arith.subf %2, %7 : vector<8x2x32xf32>
    %9 = arith.mulf %8, %8 : vector<8x2x32xf32>
    %cst_6 = arith.constant dense<0.000000e+00> : vector<8x2xf32>
    %10 = vector.multi_reduction <add>, %9, %cst_6 [2] : vector<8x2x32xf32> to vector<8x2xf32>
    %11 = vector.shape_cast %10 : vector<8x2xf32> to vector<8x2x1xf32>
    %cst_7 = arith.constant 3.200000e+01 : f32
    %12 = vector.broadcast %cst_7 : f32 to vector<8x2x1xf32>
    %13 = arith.divf %11, %12 : vector<8x2x1xf32>
    %cst_8 = arith.constant 9.99999974E-6 : f32
    %14 = vector.broadcast %cst_8 : f32 to vector<8x2x1xf32>
    %15 = arith.addf %13, %14 : vector<8x2x1xf32>
    %16 = math.rsqrt %15 : vector<8x2x1xf32>
    %17 = vector.broadcast %16 : vector<8x2x1xf32> to vector<8x2x32xf32>
    %18 = arith.mulf %8, %17 : vector<8x2x32xf32>
    %c0_9 = arith.constant 0 : index
    %c0_10 = arith.constant 0 : index
    %c0_11 = arith.constant 0 : index
    %19 = vector.load %arg3[%c0_9, %c0_10, %c0_11] : memref<1x1x32xf32, #tpu.memory_space<vmem>>, vector<1x1x32xf32>
    %20 = vector.broadcast %19 : vector<1x1x32xf32> to vector<8x2x32xf32>
    %21 = arith.mulf %18, %20 : vector<8x2x32xf32>
    %c0_12 = arith.constant 0 : index
    %c0_13 = arith.constant 0 : index
    %c0_14 = arith.constant 0 : index
    %22 = vector.load %arg4[%c0_12, %c0_13, %c0_14] : memref<1x1x32xf32, #tpu.memory_space<vmem>>, vector<1x1x32xf32>
    %23 = vector.broadcast %22 : vector<1x1x32xf32> to vector<8x2x32xf32>
    %24 = arith.addf %21, %23 : vector<8x2x32xf32>
    %25 = vector.shape_cast %24 : vector<8x2x32xf32> to vector<4x2x2x32xf32>
    %26 = vector.extract_strided_slice %25 {offsets = [0, 0, 0, 0], sizes = [4, 1, 2, 32], strides = [1, 1, 1, 1]} : vector<4x2x2x32xf32> to vector<4x1x2x32xf32>
    %27 = vector.shape_cast %26 : vector<4x1x2x32xf32> to vector<4x2x32xf32>
    %28 = vector.extract_strided_slice %25 {offsets = [0, 1, 0, 0], sizes = [4, 1, 2, 32], strides = [1, 1, 1, 1]} : vector<4x2x2x32xf32> to vector<4x1x2x32xf32>
    %29 = vector.shape_cast %28 : vector<4x1x2x32xf32> to vector<4x2x32xf32>
    %30 = arith.addf %27, %29 : vector<4x2x32xf32>
    %cst_15 = arith.constant 5.000000e-01 : f32
    %31 = vector.broadcast %cst_15 : f32 to vector<4x2x32xf32>
    %32 = arith.mulf %30, %31 : vector<4x2x32xf32>
    %c0_16 = arith.constant 0 : index
    %c0_17 = arith.constant 0 : index
    %c0_18 = arith.constant 0 : index
    %33 = vector.load %arg5[%c0_16, %c0_17, %c0_18] : memref<4x2x32xf32, #tpu.memory_space<vmem>>, vector<4x2x32xf32>
    tpu.vector_store %arg5[%c0_16, %c0_17, %c0_18], %32 {strides = array<i32>} : memref<4x2x32xf32, #tpu.memory_space<vmem>>, vector<4x2x32xf32>,
    return
  }
  func.func @transform_0(%arg0: i32) -> (i32, i32, i32) {
    %c0_i32 = arith.constant 0 : i32
    %c0_i32_0 = arith.constant 0 : i32
    %c0_i32_1 = arith.constant 0 : i32
    return %arg0, %c0_i32, %c0_i32_0 : i32, i32, i32
  }
  func.func @transform_1(%arg0: i32) -> (i32, i32, i32) {
    %c0_i32 = arith.constant 0 : i32
    %c0_i32_0 = arith.constant 0 : i32
    %c0_i32_1 = arith.constant 0 : i32
    return %arg0, %c0_i32, %c0_i32_0 : i32, i32, i32
  }
  func.func @transform_2(%arg0: i32) -> (i32, i32, i32) {
    %c0_i32 = arith.constant 0 : i32
    %c0_i32_0 = arith.constant 0 : i32
    %c0_i32_1 = arith.constant 0 : i32
    %c0_i32_2 = arith.constant 0 : i32
    return %c0_i32, %c0_i32_0, %c0_i32_1 : i32, i32, i32
  }
  func.func @transform_3(%arg0: i32) -> (i32, i32, i32) {
    %c0_i32 = arith.constant 0 : i32
    %c0_i32_0 = arith.constant 0 : i32
    %c0_i32_1 = arith.constant 0 : i32
    %c0_i32_2 = arith.constant 0 : i32
    return %c0_i32, %c0_i32_0, %c0_i32_1 : i32, i32, i32
  }
  func.func @transform_4(%arg0: i32) -> (i32, i32, i32) {
    %c0_i32 = arith.constant 0 : i32
    %c0_i32_0 = arith.constant 0 : i32
    %c0_i32_1 = arith.constant 0 : i32
    return %arg0, %c0_i32, %c0_i32_0 : i32, i32, i32
  }
}

</mosaic_0001>

<bundles_post_ra>
// kernel: res_layer_norm_gru_forward.6
= control target key start
LH: loop header
LB: loop body
LE: loop exit
PB: predicated region body
PF: predicated region fallthrough
CT: control target
= control target key end

     0   :  { %vm53_vm0 = vcmask 261120   ;;  %s303_s1 = inlined_call_operand.vmem [shape: bf16[32,32], index: 1, kind: input, shape index: {}]   ;;  %s304_s2 = inlined_call_operand.vmem [shape: bf16[32,32], index: 2, kind: input, shape index: {}]   ;;  %s305_s3 = inlined_call_operand.vmem [shape: bf16[32,32], index: 3, kind: input, shape index: {}]   ;;  %s306_s0 = inlined_call_operand.vmem [shape: f32[16,32], index: 0, kind: input, shape index: {}]   ;;  %s307_s4 = inlined_call_operand.vmem [shape: f32[1,32], index: 4, kind: input, shape index: {}]   ;;  %s308_s5 = inlined_call_operand.vmem [shape: f32[1,32], index: 5, kind: input, shape index: {}]   ;;  %s309_s6 = inlined_call_operand.vmem [shape: f32[1,32], index: 6, kind: input, shape index: {}]   ;;  %s310_s7 = inlined_call_operand.vmem [shape: f32[16,32], index: 7, kind: output, shape index: {0}]   ;;  %s311_s8 = inlined_call_operand.vmem [shape: f32[16,32], index: 8, kind: output, shape index: {1}]   ;;  %s312_s9 = inlined_call_operand.vmem [shape: f32[16,32], index: 9, kind: output, shape index: {2}]  }
   0x1   :  { %v185_v0 = vld [vmem:[%s303_s1 + $0x8] sm:$0xff]  ;;  %v184_v3 = vld [vmem:[%s303_s1] sm:$0xff] }
   0x2   :  { %v187_v1 = vld [vmem:[%s304_s2 + $0x8] sm:$0xff]  ;;  %v186_v4 = vld [vmem:[%s304_s2] sm:$0xff]  ;;  %63 = vmatpush.bf16.msra.mxu0 %v185_v0 }
   0x3   :  { %v189_v2 = vld [vmem:[%s305_s3 + $0x8] sm:$0xff]  ;;  %99 = vmatpush.bf16.msra.mxu1 %v187_v1  ;;  %v30_v5 = vld [vmem:[%s306_s0] sm:$0xff] }
   0x4   :  { %v31_v6 = vld [vmem:[%s306_s0 + $0x8] sm:$0xff]  ;;  %135 = vmatpush.bf16.msra.mxu2 %v189_v2  ;;  %v188_v7 = vld [vmem:[%s305_s3] sm:$0xff] }
   0x5   :  { %v32_v8 = vpack.c.bf16 %v31_v6, %v30_v5  ;;  %v190_v9 = vld [vmem:[%s307_s4] ss:$0 sm:$0xff] }
   0x6   :  { %64 = vmatpush.bf16.msra.mxu0 %v184_v3  ;;  %v191_v10 = vld [vmem:[%s308_s5] ss:$0 sm:$0xff] }
   0x7   :  { %100 = vmatpush.bf16.msra.mxu1 %v186_v4  ;;  %v192_v15 = vld [vmem:[%s309_s6] ss:$0 sm:$0xff] }
   0x8   :  { %136 = vmatpush.bf16.msra.mxu2 %v188_v7 }
   0x9   :  { %165 = vmatmul.msk.bf16.vlgmr.msra.gmra.mxu0 %vm53_vm0, %v32_v8 }
   0xa   :  { %174 = vmatmul.msk.bf16.vlgmr.msra.gmra.mxu1 %vm53_vm0, %v32_v8 }
   0xb   :  { %183 = vmatmul.msk.bf16.vlgmr.msra.gmra.mxu2 %vm53_vm0, %v32_v8 }
  0x86   :  { %v66_v11 = vpop.f32.mrf.mxu0 }
  0x87   :  { %v102_v12 = vpop.f32.mrf.mxu1  ;;  %v67_v13 = vadd.f32 %v190_v9, %v66_v11 }
  0x88   :  { %v103_v14 = vadd.f32 %v191_v10, %v102_v12 }
  0x89   :  { %71 = vst.msk [vmem:[%s310_s7] sm:$0xff] %vm53_vm0, %v67_v13 }
  0x8a   :  { %107 = vst.msk [vmem:[%s311_s8] sm:$0xff] %vm53_vm0, %v103_v14 }
  0x8e   :  { %v138_v16 = vpop.f32.mrf.mxu2  ;;  %v68_v18 = vpop.f32.mrf.mxu0 }
  0x8f   :  { %v139_v17 = vadd.f32 %v192_v15, %v138_v16  ;;  %v104_v19 = vpop.f32.mrf.mxu1  ;;  %v69_v20 = vadd.f32 %v190_v9, %v68_v18 }
  0x90   :  { %v105_v21 = vadd.f32 %v191_v10, %v104_v19 }
  0x91   :  { %143 = vst.msk [vmem:[%s312_s9] sm:$0xff] %vm53_vm0, %v139_v17 }
  0x92   :  { %72 = vst.msk [vmem:[%s310_s7 + $0x8] sm:$0xff] %vm53_vm0, %v69_v20 }
  0x93   :  { %108 = vst.msk [vmem:[%s311_s8 + $0x8] sm:$0xff] %vm53_vm0, %v105_v21 }
  0x96   :  { %v140_v22 = vpop.f32.mrf.mxu2 }
  0x97   :  { %v141_v23 = vadd.f32 %v192_v15, %v140_v22 }
  0x99   :  { %144 = vst.msk [vmem:[%s312_s9 + $0x8] sm:$0xff] %vm53_vm0, %v141_v23 }

// kernel: res_layer_norm_gru_forward.8
= control target key start
LH: loop header
LB: loop body
LE: loop exit
PB: predicated region body
PF: predicated region fallthrough
CT: control target
= control target key end

     0   :  { %vm22_vm0 = vcmask 254976   ;;  %v263_v16 = vmov 32.0   ;;  %s471_s0 = inlined_call_operand.vmem [shape: f32[8,2,32], index: 0, kind: input, shape index: {}]   ;;  %s472_s1 = inlined_call_operand.vmem [shape: f32[1,1,32], index: 1, kind: input, shape index: {}]   ;;  %s473_s2 = inlined_call_operand.vmem [shape: f32[1,1,32], index: 2, kind: input, shape index: {}]   ;;  %s474_s3 = inlined_call_operand.vmem [shape: f32[8,2,32], index: 3, kind: output, shape index: {}]  }
   0x1   :  { %v18_v0 = vld [vmem:[%s471_s0 + $0x8] sm:$0x3]  ;;  %v16_v1 = vld [vmem:[%s471_s0 + $0x4] sm:$0x3]  ;;  %v14_v2 = vld [vmem:[%s471_s0] sm:$0x3]  ;;  %245 = vrcp.f32 %v263_v16 }
   0x2   :  { %v35_v3 = vsel %vm22_vm0, %v18_v0, 0.0  ;;  %v29_v4 = vsel %vm22_vm0, %v16_v1, 0.0  ;;  %v23_v5 = vsel %vm22_vm0, %v14_v2, 0.0  ;;  %v19_v6 = vld [vmem:[%s471_s0 + $0xa] sm:$0x3] }
   0x3   :  { %36 = vadd.xlane.f32.xlu2 %v35_v3  ;;  %30 = vadd.xlane.f32.xlu1 %v29_v4  ;;  %v17_v7 = vld [vmem:[%s471_s0 + $0x6] sm:$0x3]  ;;  %v15_v8 = vld [vmem:[%s471_s0 + $0x2] sm:$0x3]  ;;  %v38_v9 = vsel %vm22_vm0, %v19_v6, 0.0 }
   0x4   :  { %24 = vadd.xlane.f32.xlu0 %v23_v5  ;;  %v32_v10 = vsel %vm22_vm0, %v17_v7, 0.0  ;;  %v26_v11 = vsel %vm22_vm0, %v15_v8, 0.0  ;;  %v21_v12 = vld [vmem:[%s471_s0 + $0xe] sm:$0x3]  ;;  %v20_v13 = vld [vmem:[%s471_s0 + $0xc] sm:$0x3] }
   0x5   :  { %v44_v14 = vsel %vm22_vm0, %v21_v12, 0.0  ;;  %v41_v15 = vsel %vm22_vm0, %v20_v13, 0.0 }
   0x7   :  { %v246_v17 = vpop.eup %245 }
   0x8   :  { %v48_v18 = vmul.f32 32.0, %v246_v17  ;;  %vm52_vm1 = vweird.f32 %v246_v17 }
   0xa   :  { %v49_v19 = vsub.f32 1.0, %v48_v18 }
   0xb   :  { %39 = vadd.xlane.f32.xlu2 %v38_v9  ;;  %33 = vadd.xlane.f32.xlu1 %v32_v10 }
   0xc   :  { %27 = vadd.xlane.f32.xlu0 %v26_v11  ;;  %v50_v20 = vmul.f32 %v246_v17, %v49_v19 }
   0xe   :  { %v51_v21 = vadd.f32 %v246_v17, %v50_v20 }
  0x10   :  { %v316_v22 = vsel %vm52_vm1, %v246_v17, %v51_v21 }
  0x13   :  { %45 = vadd.xlane.f32.xlu1 %v44_v14 }
  0x14   :  { %42 = vadd.xlane.f32.xlu0 %v41_v15 }
  0x76   :  { %v37_v23 = vpop.xlane.xlu2 %36  ;;  %v31_v24 = vpop.xlane.xlu1 %30 }
  0x77   :  { %v56_v25 = vmul.f32 %v316_v22, %v31_v24  ;;  %v25_v26 = vpop.xlane.xlu0 %24  ;;  %v58_v39 = vmul.f32 %v316_v22, %v37_v23 }
  0x78   :  { %v54_v27 = vmul.f32 %v316_v22, %v25_v26 }
  0x79   :  { %v320_v28 = vsub.f32 %v16_v1, %v56_v25  ;;  %v344_v46 = vsub.f32 %v18_v0, %v58_v39 }
  0x7a   :  { %v322_v29 = vsub.f32 %v14_v2, %v54_v27 }
  0x7b   :  { %v72_v30 = vmul.f32 %v320_v28, %v320_v28  ;;  %v74_v55 = vmul.f32 %v344_v46, %v344_v46 }
  0x7c   :  { %v70_v31 = vmul.f32 %v322_v29, %v322_v29 }
  0x7d   :  { %v84_v32 = vsel %vm22_vm0, %v72_v30, 0.0  ;;  %v90_v58 = vsel %vm22_vm0, %v74_v55, 0.0 }
  0x7e   :  { %v40_v33 = vpop.xlane.xlu2 %39  ;;  %85 = vadd.xlane.f32.xlu1 %v84_v32  ;;  %v34_v34 = vpop.xlane.xlu1 %33  ;;  %v78_v35 = vsel %vm22_vm0, %v70_v31, 0.0 }
  0x7f   :  { %v59_v36 = vmul.f32 %v316_v22, %v40_v33  ;;  %v57_v37 = vmul.f32 %v316_v22, %v34_v34  ;;  %79 = vadd.xlane.f32.xlu2 %v78_v35  ;;  %v28_v38 = vpop.xlane.xlu0 %27 }
  0x80   :  { %v55_v40 = vmul.f32 %v316_v22, %v28_v38 }
  0x81   :  { %v334_v41 = vsub.f32 %v19_v6, %v59_v36  ;;  %v336_v42 = vsub.f32 %v17_v7, %v57_v37  ;;  %v384_v37 = vld [vmem:[%s472_s1] ss:$0 sm:$0xff] }
  0x82   :  { %v338_v43 = vsub.f32 %v15_v8, %v55_v40 }
  0x83   :  { %v75_v44 = vmul.f32 %v334_v41, %v334_v41  ;;  %v73_v45 = vmul.f32 %v336_v42, %v336_v42 }
  0x84   :  { %v71_v47 = vmul.f32 %v338_v43, %v338_v43 }
  0x85   :  { %v93_v48 = vsel %vm22_vm0, %v75_v44, 0.0  ;;  %v87_v49 = vsel %vm22_vm0, %v73_v45, 0.0 }
  0x86   :  { %94 = vadd.xlane.f32.xlu1 %v93_v48  ;;  %v81_v50 = vsel %vm22_vm0, %v71_v47, 0.0  ;;  %v46_v51 = vpop.xlane.xlu1 %45  ;;  %v394_v48 = vld [vmem:[%s473_s2] ss:$0 sm:$0xff] }
  0x87   :  { %88 = vadd.xlane.f32.xlu2 %v87_v49  ;;  %82 = vadd.xlane.f32.xlu0 %v81_v50  ;;  %v43_v52 = vpop.xlane.xlu0 %42  ;;  %v61_v54 = vmul.f32 %v316_v22, %v46_v51 }
  0x88   :  { %v60_v53 = vmul.f32 %v316_v22, %v43_v52 }
  0x89   :  { %v357_v57 = vsub.f32 %v21_v12, %v61_v54 }
  0x8a   :  { %v355_v56 = vsub.f32 %v20_v13, %v60_v53 }
  0x8b   :  { %v77_v61 = vmul.f32 %v357_v57, %v357_v57 }
  0x8c   :  { %v76_v59 = vmul.f32 %v355_v56, %v355_v56 }
  0x8d   :  { %v99_v62 = vsel %vm22_vm0, %v77_v61, 0.0 }
  0x8e   :  { %v96_v60 = vsel %vm22_vm0, %v76_v59, 0.0 }
  0x8f   :  { %91 = vadd.xlane.f32.xlu0 %v90_v58  ;;  %97 = vadd.xlane.f32.xlu2 %v96_v60 }
  0x97   :  { %100 = vadd.xlane.f32.xlu0 %v99_v62 }
  0xf1   :  { %v86_v63 = vpop.xlane.xlu1 %85 }
  0xf2   :  { %v104_v0 = vmul.f32 %v86_v63, %v316_v22  ;;  %v80_v1 = vpop.xlane.xlu2 %79 }
  0xf3   :  { %v102_v2 = vmul.f32 %v80_v1, %v316_v22 }
  0xf4   :  { %v112_v3 = vadd.f32 1e-05, %v104_v0 }
  0xf5   :  { %v110_v4 = vadd.f32 1e-05, %v102_v2 }
  0xf6   :  { %247 = vrsqrt.f32 %v112_v3  ;;  %vm144_vm2 = vweird.f32 %v112_v3 }
  0xf7   :  { %249 = vrsqrt.f32 %v110_v4  ;;  %vm124_vm6 = vweird.f32 %v110_v4 }
  0xf9   :  { %v95_v5 = vpop.xlane.xlu1 %94 }
  0xfa   :  { %v107_v6 = vmul.f32 %v95_v5, %v316_v22  ;;  %v89_v7 = vpop.xlane.xlu2 %88  ;;  %v83_v8 = vpop.xlane.xlu0 %82 }
  0xfb   :  { %v105_v9 = vmul.f32 %v89_v7, %v316_v22  ;;  %v103_v10 = vmul.f32 %v83_v8, %v316_v22 }
  0xfc   :  { %v248_v11 = vpop.eup %247  ;;  %v115_v12 = vadd.f32 1e-05, %v107_v6 }
  0xfd   :  { %v250_v13 = vpop.eup %249  ;;  %v139_v14 = vmul.f32 %v248_v11, %v112_v3  ;;  %v371_v15 = vadd.f32 1e-05, %v105_v9  ;;  %v373_v16 = vadd.f32 1e-05, %v103_v10  ;;  %vm145_vm3 = vweird.f32 %v248_v11 }
  0xfe   :  { %v119_v17 = vmul.f32 %v250_v13, %v110_v4  ;;  %251 = vrsqrt.f32 %v115_v12  ;;  %vm125_vm4 = vweird.f32 %v250_v13  ;;  %vm146_vm5 = vmor %vm144_vm2, %vm145_vm3  ;;  %vm174_vm8 = vweird.f32 %v115_v12 }
  0xff   :  { %v140_v18 = vmul.f32 %v248_v11, %v139_v14  ;;  %253 = vrsqrt.f32 %v371_v15  ;;  %vm126_vm7 = vmor %vm124_vm6, %vm125_vm4  ;;  %vm154_vm10 = vweird.f32 %v371_v15  ;;  %vm134_vm15 = vweird.f32 %v373_v16 }
 0x100   :  { %v120_v19 = vmul.f32 %v250_v13, %v119_v17  ;;  %255 = vrsqrt.f32 %v373_v16 }
 0x101   :  { %v141_v20 = vmul.f32 0.5, %v140_v18 }
 0x102   :  { %v121_v21 = vmul.f32 0.5, %v120_v19  ;;  %v98_v23 = vpop.xlane.xlu2 %97  ;;  %v92_v24 = vpop.xlane.xlu0 %91 }
 0x103   :  { %v142_v25 = vsub.f32 1.5, %v141_v20  ;;  %v108_v26 = vmul.f32 %v98_v23, %v316_v22  ;;  %v106_v27 = vmul.f32 %v92_v24, %v316_v22 }
 0x104   :  { %v252_v30 = vpop.eup %251  ;;  %v122_v31 = vsub.f32 1.5, %v121_v21 }
 0x105   :  { %v254_v32 = vpop.eup %253  ;;  %v143_v33 = vmul.f32 %v248_v11, %v142_v25  ;;  %v169_v34 = vmul.f32 %v252_v30, %v115_v12  ;;  %v379_v35 = vadd.f32 1e-05, %v108_v26  ;;  %v388_v40 = vadd.f32 1e-05, %v106_v27 }
 0x106   :  { %v256_v36 = vpop.eup %255  ;;  %v123_v38 = vmul.f32 %v250_v13, %v122_v31  ;;  %v149_v39 = vmul.f32 %v254_v32, %v371_v15  ;;  %vm175_vm9 = vweird.f32 %v252_v30  ;;  %vm155_vm12 = vweird.f32 %v254_v32 }
 0x107   :  { %v147_v44 = vsel %vm146_vm5, %v248_v11, %v143_v33  ;;  %v170_v45 = vmul.f32 %v252_v30, %v169_v34  ;;  %v129_v47 = vmul.f32 %v256_v36, %v373_v16  ;;  %257 = vrsqrt.f32 %v379_v35  ;;  %vm406_vm11 = vmor %vm174_vm8, %vm175_vm9 }
 0x108   :  { %v200_v49 = vmul.f32 %v147_v44, %v320_v28  ;;  %v127_v50 = vsel %vm126_vm7, %v250_v13, %v123_v38  ;;  %v150_v51 = vmul.f32 %v254_v32, %v149_v39  ;;  %259 = vrsqrt.f32 %v388_v40  ;;  %vm156_vm14 = vmor %vm154_vm10, %vm155_vm12 }
 0x109   :  { %v198_v52 = vmul.f32 %v127_v50, %v322_v29  ;;  %v171_v53 = vmul.f32 0.5, %v170_v45  ;;  %v130_v54 = vmul.f32 %v256_v36, %v129_v47  ;;  %vm135_vm13 = vweird.f32 %v256_v36 }
 0x10a   :  { %v212_v55 = vmul.f32 %v384_v37, %v200_v49  ;;  %v151_v58 = vmul.f32 0.5, %v150_v51  ;;  %v101_v59 = vpop.xlane.xlu0 %100  ;;  %vm136_vm1 = vmor %vm134_vm15, %vm135_vm13  ;;  %vm184_vm2 = vweird.f32 %v379_v35  ;;  %vm164_vm6 = vweird.f32 %v388_v40 }
 0x10b   :  { %v210_v60 = vmul.f32 %v384_v37, %v198_v52  ;;  %v172_v28 = vsub.f32 1.5, %v171_v53  ;;  %v131_v61 = vmul.f32 0.5, %v130_v54  ;;  %v109_v62 = vmul.f32 %v101_v59, %v316_v22 }
 0x10c   :  { %v224_v63 = vadd.f32 %v394_v48, %v212_v55  ;;  %v152_v0 = vsub.f32 1.5, %v151_v58 }
 0x10d   :  { %v222_v1 = vadd.f32 %v394_v48, %v210_v60  ;;  %v173_v2 = vmul.f32 %v252_v30, %v172_v28  ;;  %v132_v3 = vsub.f32 1.5, %v131_v61  ;;  %v117_v4 = vadd.f32 1e-05, %v109_v62  ;;  %v258_v5 = vpop.eup %257 }
 0x10e   :  { %232 = vst.msk [vmem:[%s474_s3 + $0x4] sm:$0x3] %vm22_vm0, %v224_v63  ;;  %v153_v22 = vmul.f32 %v254_v32, %v152_v0  ;;  %v179_v8 = vmul.f32 %v258_v5, %v379_v35  ;;  %v260_v9 = vpop.eup %259  ;;  %vm185_vm3 = vweird.f32 %v258_v5 }
 0x10f   :  { %230 = vst.msk [vmem:[%s474_s3] sm:$0x3] %vm22_vm0, %v222_v1  ;;  %v177_v6 = vsel %vm406_vm11, %v252_v30, %v173_v2  ;;  %v133_v7 = vmul.f32 %v256_v36, %v132_v3  ;;  %261 = vrsqrt.f32 %v117_v4  ;;  %v159_v17 = vmul.f32 %v260_v9, %v388_v40  ;;  %vm186_vm5 = vmor %vm184_vm2, %vm185_vm3 }
 0x110   :  { %v203_v10 = vmul.f32 %v177_v6, %v334_v41  ;;  %v157_v11 = vsel %vm156_vm14, %v254_v32, %v153_v22  ;;  %v180_v14 = vmul.f32 %v258_v5, %v179_v8  ;;  %vm165_vm4 = vweird.f32 %v260_v9 }
 0x111   :  { %v201_v12 = vmul.f32 %v157_v11, %v336_v42  ;;  %v137_v13 = vsel %vm136_vm1, %v256_v36, %v133_v7  ;;  %v160_v20 = vmul.f32 %v260_v9, %v159_v17  ;;  %vm166_vm7 = vmor %vm164_vm6, %vm165_vm4  ;;  %vm194_vm9 = vweird.f32 %v117_v4 }
 0x112   :  { %v215_v15 = vmul.f32 %v384_v37, %v203_v10  ;;  %v199_v18 = vmul.f32 %v137_v13, %v338_v43  ;;  %v181_v19 = vmul.f32 0.5, %v180_v14 }
 0x113   :  { %v213_v16 = vmul.f32 %v384_v37, %v201_v12  ;;  %v161_v24 = vmul.f32 0.5, %v160_v20 }
 0x114   :  { %v227_v41 = vadd.f32 %v394_v48, %v215_v15  ;;  %v211_v21 = vmul.f32 %v384_v37, %v199_v18  ;;  %v182_v23 = vsub.f32 1.5, %v181_v19 }
 0x115   :  { %v225_v42 = vadd.f32 %v394_v48, %v213_v16  ;;  %v262_v25 = vpop.eup %261  ;;  %v162_v27 = vsub.f32 1.5, %v161_v24 }
 0x116   :  { %235 = vst.msk [vmem:[%s474_s3 + $0xa] sm:$0x3] %vm22_vm0, %v227_v41  ;;  %v223_v43 = vadd.f32 %v394_v48, %v211_v21  ;;  %v183_v26 = vmul.f32 %v258_v5, %v182_v23  ;;  %v189_v30 = vmul.f32 %v262_v25, %v117_v4  ;;  %vm195_vm8 = vweird.f32 %v262_v25 }
 0x117   :  { %233 = vst.msk [vmem:[%s474_s3 + $0x6] sm:$0x3] %vm22_vm0, %v225_v42  ;;  %v163_v32 = vmul.f32 %v260_v9, %v162_v27  ;;  %vm196_vm10 = vmor %vm194_vm9, %vm195_vm8 }
 0x118   :  { %231 = vst.msk [vmem:[%s474_s3 + $0x2] sm:$0x3] %vm22_vm0, %v223_v43  ;;  %v187_v31 = vsel %vm186_vm5, %v258_v5, %v183_v26  ;;  %v190_v33 = vmul.f32 %v262_v25, %v189_v30 }
 0x119   :  { %v204_v34 = vmul.f32 %v187_v31, %v355_v56  ;;  %v167_v35 = vsel %vm166_vm7, %v260_v9, %v163_v32 }
 0x11a   :  { %v191_v36 = vmul.f32 0.5, %v190_v33  ;;  %v202_v39 = vmul.f32 %v167_v35, %v344_v46 }
 0x11b   :  { %v216_v38 = vmul.f32 %v384_v37, %v204_v34 }
 0x11c   :  { %v192_v44 = vsub.f32 1.5, %v191_v36  ;;  %v214_v47 = vmul.f32 %v384_v37, %v202_v39 }
 0x11d   :  { %v228_v45 = vadd.f32 %v394_v48, %v216_v38 }
 0x11e   :  { %v193_v49 = vmul.f32 %v262_v25, %v192_v44  ;;  %v226_v56 = vadd.f32 %v394_v48, %v214_v47 }
 0x11f   :  { %236 = vst.msk [vmem:[%s474_s3 + $0xc] sm:$0x3] %vm22_vm0, %v228_v45 }
 0x120   :  { %v197_v40 = vsel %vm196_vm10, %v262_v25, %v193_v49  ;;  %234 = vst.msk [vmem:[%s474_s3 + $0x8] sm:$0x3] %vm22_vm0, %v226_v56 }
 0x121   :  { %v205_v46 = vmul.f32 %v197_v40, %v357_v57 }
 0x123   :  { %v217_v50 = vmul.f32 %v384_v37, %v205_v46 }
 0x125   :  { %v229_v51 = vadd.f32 %v394_v48, %v217_v50 }
 0x127   :  { %237 = vst.msk [vmem:[%s474_s3 + $0xe] sm:$0x3] %vm22_vm0, %v229_v51 }

// kernel: res_layer_norm_gru_forward.11
= control target key start
LH: loop header
LB: loop body
LE: loop exit
PB: predicated region body
PF: predicated region fallthrough
CT: control target
= control target key end

     0   :  { %vm41_vm0 = vcmask 254976   ;;  %v286_v32 = vmov 32.0   ;;  %s533_s0 = inlined_call_operand.vmem [shape: f32[8,2,32], index: 0, kind: input, shape index: {}]   ;;  %s534_s1 = inlined_call_operand.vmem [shape: f32[8,2,32], index: 1, kind: input, shape index: {}]   ;;  %s535_s2 = inlined_call_operand.vmem [shape: f32[1,1,32], index: 2, kind: input, shape index: {}]   ;;  %s536_s3 = inlined_call_operand.vmem [shape: f32[1,1,32], index: 3, kind: input, shape index: {}]   ;;  %s537_s4 = inlined_call_operand.vmem [shape: f32[4,2,32], index: 4, kind: output, shape index: {}]  }
   0x1   :  { %v21_v0 = vld [vmem:[%s533_s0 + $0x8] sm:$0x3]  ;;  %v19_v2 = vld [vmem:[%s533_s0 + $0x4] sm:$0x3]  ;;  %v17_v5 = vld [vmem:[%s533_s0] sm:$0x3]  ;;  %268 = vrcp.f32 %v286_v32 }
   0x2   :  { %v29_v1 = vld [vmem:[%s534_s1 + $0x8] sm:$0x3]  ;;  %v27_v4 = vld [vmem:[%s534_s1 + $0x4] sm:$0x3]  ;;  %v25_v6 = vld [vmem:[%s534_s1] sm:$0x3] }
   0x3   :  { %v321_v3 = vadd.f32 %v29_v1, %v21_v0  ;;  %v35_v7 = vadd.f32 %v27_v4, %v19_v2  ;;  %v33_v8 = vadd.f32 %v25_v6, %v17_v5  ;;  %v22_v9 = vld [vmem:[%s533_s0 + $0xa] sm:$0x3]  ;;  %v20_v11 = vld [vmem:[%s533_s0 + $0x6] sm:$0x3]  ;;  %v18_v14 = vld [vmem:[%s533_s0 + $0x2] sm:$0x3] }
   0x4   :  { %v30_v10 = vld [vmem:[%s534_s1 + $0xa] sm:$0x3]  ;;  %v28_v13 = vld [vmem:[%s534_s1 + $0x6] sm:$0x3]  ;;  %v26_v17 = vld [vmem:[%s534_s1 + $0x2] sm:$0x3] }
   0x5   :  { %v54_v12 = vsel %vm41_vm0, %v321_v3, 0.0  ;;  %v48_v15 = vsel %vm41_vm0, %v35_v7, 0.0  ;;  %v42_v16 = vsel %vm41_vm0, %v33_v8, 0.0  ;;  %v38_v18 = vadd.f32 %v30_v10, %v22_v9  ;;  %v23_v24 = vld [vmem:[%s533_s0 + $0xc] sm:$0x3] }
   0x6   :  { %55 = vadd.xlane.f32.xlu2 %v54_v12  ;;  %49 = vadd.xlane.f32.xlu1 %v48_v15  ;;  %v36_v19 = vadd.f32 %v28_v13, %v20_v11  ;;  %v34_v20 = vadd.f32 %v26_v17, %v18_v14  ;;  %v31_v25 = vld [vmem:[%s534_s1 + $0xc] sm:$0x3]  ;;  %v24_v26 = vld [vmem:[%s533_s0 + $0xe] sm:$0x3] }
   0x7   :  { %43 = vadd.xlane.f32.xlu0 %v42_v16  ;;  %v57_v21 = vsel %vm41_vm0, %v38_v18, 0.0  ;;  %v32_v27 = vld [vmem:[%s534_s1 + $0xe] sm:$0x3]  ;;  %v39_v28 = vadd.f32 %v31_v25, %v23_v24  ;;  %v269_v33 = vpop.eup %268 }
   0x8   :  { %v51_v22 = vsel %vm41_vm0, %v36_v19, 0.0  ;;  %v45_v23 = vsel %vm41_vm0, %v34_v20, 0.0  ;;  %v40_v29 = vadd.f32 %v32_v27, %v24_v26  ;;  %v67_v34 = vmul.f32 32.0, %v269_v33 }
   0x9   :  { %v60_v30 = vsel %vm41_vm0, %v39_v28, 0.0  ;;  %vm71_vm1 = vweird.f32 %v269_v33 }
   0xa   :  { %v63_v31 = vsel %vm41_vm0, %v40_v29, 0.0  ;;  %v68_v35 = vsub.f32 1.0, %v67_v34 }
   0xc   :  { %v69_v36 = vmul.f32 %v269_v33, %v68_v35 }
   0xe   :  { %58 = vadd.xlane.f32.xlu2 %v57_v21  ;;  %52 = vadd.xlane.f32.xlu1 %v51_v22  ;;  %v70_v37 = vadd.f32 %v269_v33, %v69_v36 }
   0xf   :  { %46 = vadd.xlane.f32.xlu0 %v45_v23 }
  0x10   :  { %v371_v38 = vsel %vm71_vm1, %v269_v33, %v70_v37 }
  0x16   :  { %64 = vadd.xlane.f32.xlu1 %v63_v31 }
  0x17   :  { %61 = vadd.xlane.f32.xlu0 %v60_v30 }
  0x79   :  { %v56_v39 = vpop.xlane.xlu2 %55  ;;  %v50_v40 = vpop.xlane.xlu1 %49 }
  0x7a   :  { %v44_v41 = vpop.xlane.xlu0 %43  ;;  %v75_v42 = vmul.f32 %v371_v38, %v50_v40  ;;  %v77_v56 = vmul.f32 %v371_v38, %v56_v39 }
  0x7b   :  { %v73_v43 = vmul.f32 %v371_v38, %v44_v41 }
  0x7c   :  { %v375_v44 = vsub.f32 %v35_v7, %v75_v42  ;;  %v402_v63 = vsub.f32 %v321_v3, %v77_v56 }
  0x7d   :  { %v377_v45 = vsub.f32 %v33_v8, %v73_v43 }
  0x7e   :  { %v91_v46 = vmul.f32 %v375_v44, %v375_v44  ;;  %v93_v8 = vmul.f32 %v402_v63, %v402_v63 }
  0x7f   :  { %v89_v47 = vmul.f32 %v377_v45, %v377_v45 }
  0x80   :  { %v103_v49 = vsel %vm41_vm0, %v91_v46, 0.0  ;;  %v109_v11 = vsel %vm41_vm0, %v93_v8, 0.0 }
  0x81   :  { %v59_v48 = vpop.xlane.xlu2 %58  ;;  %v97_v50 = vsel %vm41_vm0, %v89_v47, 0.0  ;;  %104 = vadd.xlane.f32.xlu1 %v103_v49  ;;  %v53_v52 = vpop.xlane.xlu1 %52 }
  0x82   :  { %v78_v51 = vmul.f32 %v371_v38, %v59_v48  ;;  %98 = vadd.xlane.f32.xlu2 %v97_v50  ;;  %v47_v53 = vpop.xlane.xlu0 %46  ;;  %v76_v54 = vmul.f32 %v371_v38, %v53_v52 }
  0x83   :  { %v74_v55 = vmul.f32 %v371_v38, %v47_v53 }
  0x84   :  { %v389_v57 = vsub.f32 %v38_v18, %v78_v51  ;;  %v391_v58 = vsub.f32 %v36_v19, %v76_v54 }
  0x85   :  { %v393_v59 = vsub.f32 %v34_v20, %v74_v55 }
  0x86   :  { %v94_v60 = vmul.f32 %v389_v57, %v389_v57  ;;  %v92_v61 = vmul.f32 %v391_v58, %v391_v58 }
  0x87   :  { %v90_v62 = vmul.f32 %v393_v59, %v393_v59 }
  0x88   :  { %v112_v0 = vsel %vm41_vm0, %v94_v60, 0.0  ;;  %v106_v1 = vsel %vm41_vm0, %v92_v61, 0.0 }
  0x89   :  { %v100_v2 = vsel %vm41_vm0, %v90_v62, 0.0  ;;  %113 = vadd.xlane.f32.xlu1 %v112_v0  ;;  %v65_v5 = vpop.xlane.xlu1 %64 }
  0x8a   :  { %107 = vadd.xlane.f32.xlu2 %v106_v1  ;;  %v62_v4 = vpop.xlane.xlu0 %61  ;;  %101 = vadd.xlane.f32.xlu0 %v100_v2  ;;  %v80_v7 = vmul.f32 %v371_v38, %v65_v5 }
  0x8b   :  { %v79_v6 = vmul.f32 %v371_v38, %v62_v4 }
  0x8c   :  { %v415_v10 = vsub.f32 %v40_v29, %v80_v7 }
  0x8d   :  { %v411_v3 = vsub.f32 %v39_v28, %v79_v6 }
  0x8e   :  { %v96_v13 = vmul.f32 %v415_v10, %v415_v10 }
  0x8f   :  { %v95_v9 = vmul.f32 %v411_v3, %v411_v3 }
  0x90   :  { %v118_v14 = vsel %vm41_vm0, %v96_v13, 0.0 }
  0x91   :  { %v115_v12 = vsel %vm41_vm0, %v95_v9, 0.0 }
  0x92   :  { %116 = vadd.xlane.f32.xlu2 %v115_v12  ;;  %110 = vadd.xlane.f32.xlu0 %v109_v11  ;;  %v466_v12 = vld [vmem:[%s535_s2] ss:$0 sm:$0xff] }
  0x9a   :  { %119 = vadd.xlane.f32.xlu0 %v118_v14 }
  0xf4   :  { %v105_v15 = vpop.xlane.xlu1 %104 }
  0xf5   :  { %v99_v16 = vpop.xlane.xlu2 %98  ;;  %v123_v17 = vmul.f32 %v105_v15, %v371_v38 }
  0xf6   :  { %v121_v18 = vmul.f32 %v99_v16, %v371_v38 }
  0xf7   :  { %v131_v19 = vadd.f32 1e-05, %v123_v17 }
  0xf8   :  { %v129_v20 = vadd.f32 1e-05, %v121_v18 }
  0xf9   :  { %270 = vrsqrt.f32 %v131_v19  ;;  %vm163_vm2 = vweird.f32 %v131_v19 }
  0xfa   :  { %272 = vrsqrt.f32 %v129_v20  ;;  %vm143_vm6 = vweird.f32 %v129_v20 }
  0xfc   :  { %v114_v21 = vpop.xlane.xlu1 %113 }
  0xfd   :  { %v108_v22 = vpop.xlane.xlu2 %107  ;;  %v126_v23 = vmul.f32 %v114_v21, %v371_v38  ;;  %v102_v25 = vpop.xlane.xlu0 %101 }
  0xfe   :  { %v124_v24 = vmul.f32 %v108_v22, %v371_v38  ;;  %v122_v26 = vmul.f32 %v102_v25, %v371_v38  ;;  %v267_v25 = vld [vmem:[%s536_s3] ss:$0 sm:$0xff] }
  0xff   :  { %v271_v27 = vpop.eup %270  ;;  %v427_v28 = vadd.f32 1e-05, %v126_v23 }
 0x100   :  { %v132_v29 = vadd.f32 1e-05, %v124_v24  ;;  %v273_v30 = vpop.eup %272  ;;  %v158_v31 = vmul.f32 %v271_v27, %v131_v19  ;;  %v429_v32 = vadd.f32 1e-05, %v122_v26  ;;  %vm164_vm3 = vweird.f32 %v271_v27 }
 0x101   :  { %v138_v33 = vmul.f32 %v273_v30, %v129_v20  ;;  %274 = vrsqrt.f32 %v427_v28  ;;  %vm144_vm4 = vweird.f32 %v273_v30  ;;  %vm447_vm5 = vmor %vm163_vm2, %vm164_vm3  ;;  %vm193_vm10 = vweird.f32 %v427_v28 }
 0x102   :  { %v159_v34 = vmul.f32 %v271_v27, %v158_v31  ;;  %276 = vrsqrt.f32 %v132_v29  ;;  %vm454_vm7 = vmor %vm143_vm6, %vm144_vm4  ;;  %vm173_vm8 = vweird.f32 %v132_v29  ;;  %vm153_vm14 = vweird.f32 %v429_v32 }
 0x103   :  { %v139_v35 = vmul.f32 %v273_v30, %v138_v33  ;;  %278 = vrsqrt.f32 %v429_v32 }
 0x104   :  { %v160_v36 = vmul.f32 0.5, %v159_v34 }
 0x105   :  { %v117_v37 = vpop.xlane.xlu2 %116  ;;  %v140_v39 = vmul.f32 0.5, %v139_v35  ;;  %v111_v41 = vpop.xlane.xlu0 %110 }
 0x106   :  { %v127_v40 = vmul.f32 %v117_v37, %v371_v38  ;;  %v161_v42 = vsub.f32 1.5, %v160_v36  ;;  %v125_v43 = vmul.f32 %v111_v41, %v371_v38 }
 0x107   :  { %v435_v46 = vpop.eup %274  ;;  %v141_v47 = vsub.f32 1.5, %v140_v39 }
 0x108   :  { %v437_v48 = vadd.f32 1e-05, %v127_v40  ;;  %v277_v49 = vpop.eup %276  ;;  %v162_v50 = vmul.f32 %v271_v27, %v161_v42  ;;  %v188_v51 = vmul.f32 %v435_v46, %v427_v28  ;;  %v441_v52 = vadd.f32 1e-05, %v125_v43 }
 0x109   :  { %v279_v53 = vpop.eup %278  ;;  %v168_v54 = vmul.f32 %v277_v49, %v132_v29  ;;  %v142_v55 = vmul.f32 %v273_v30, %v141_v47  ;;  %vm174_vm9 = vweird.f32 %v277_v49  ;;  %vm194_vm12 = vweird.f32 %v435_v46 }
 0x10a   :  { %280 = vrsqrt.f32 %v437_v48  ;;  %v189_v56 = vmul.f32 %v435_v46, %v188_v51  ;;  %v148_v60 = vmul.f32 %v279_v53, %v429_v32  ;;  %v166_v0 = vsel %vm447_vm5, %v271_v27, %v162_v50  ;;  %vm175_vm13 = vmor %vm173_vm8, %vm174_vm9 }
 0x10b   :  { %v169_v62 = vmul.f32 %v277_v49, %v168_v54  ;;  %282 = vrsqrt.f32 %v441_v52  ;;  %v146_v7 = vsel %vm454_vm7, %v273_v30, %v142_v55  ;;  %v219_v13 = vmul.f32 %v166_v0, %v375_v44  ;;  %vm487_vm1 = vmor %vm193_vm10, %vm194_vm12 }
 0x10c   :  { %v190_v1 = vmul.f32 0.5, %v189_v56  ;;  %v149_v2 = vmul.f32 %v279_v53, %v148_v60  ;;  %vm154_vm11 = vweird.f32 %v279_v53  ;;  %vm203_vm2 = vweird.f32 %v437_v48 }
 0x10d   :  { %v170_v5 = vmul.f32 0.5, %v169_v62  ;;  %v120_v6 = vpop.xlane.xlu0 %119  ;;  %v231_v22 = vmul.f32 %v466_v12, %v219_v13  ;;  %vm155_vm15 = vmor %vm153_vm14, %vm154_vm11  ;;  %vm183_vm5 = vweird.f32 %v441_v52 }
 0x10e   :  { %v150_v8 = vmul.f32 0.5, %v149_v2  ;;  %v128_v9 = vmul.f32 %v120_v6, %v371_v38  ;;  %v191_v14 = vsub.f32 1.5, %v190_v1  ;;  %v217_v38 = vmul.f32 %v146_v7, %v377_v45 }
 0x10f   :  { %v171_v15 = vsub.f32 1.5, %v170_v5 }
 0x110   :  { %v461_v11 = vpop.eup %280  ;;  %v151_v16 = vsub.f32 1.5, %v150_v8  ;;  %v474_v19 = vadd.f32 1e-05, %v128_v9  ;;  %v192_v23 = vmul.f32 %v435_v46, %v191_v14  ;;  %v229_v31 = vmul.f32 %v466_v12, %v217_v38 }
 0x111   :  { %v198_v17 = vmul.f32 %v461_v11, %v437_v48  ;;  %v172_v18 = vmul.f32 %v277_v49, %v171_v15  ;;  %v283_v20 = vpop.eup %282  ;;  %vm204_vm4 = vweird.f32 %v461_v11 }
 0x112   :  { %v152_v44 = vmul.f32 %v279_v53, %v151_v16  ;;  %v178_v45 = vmul.f32 %v283_v20, %v441_v52  ;;  %284 = vrsqrt.f32 %v474_v19  ;;  %v196_v28 = vsel %vm487_vm1, %v435_v46, %v192_v23  ;;  %vm205_vm7 = vmor %vm203_vm2, %vm204_vm4 }
 0x113   :  { %v199_v21 = vmul.f32 %v461_v11, %v198_v17  ;;  %v176_v24 = vsel %vm175_vm13, %v277_v49, %v172_v18  ;;  %v241_v40 = vadd.f32 %v267_v25, %v229_v31  ;;  %vm184_vm3 = vweird.f32 %v283_v20 }
 0x114   :  { %v220_v27 = vmul.f32 %v176_v24, %v391_v58  ;;  %v156_v29 = vsel %vm155_vm15, %v279_v53, %v152_v44  ;;  %v179_v33 = vmul.f32 %v283_v20, %v178_v45  ;;  %v243_v58 = vadd.f32 %v267_v25, %v231_v22  ;;  %vm185_vm6 = vmor %vm183_vm5, %vm184_vm3 }
 0x115   :  { %v200_v30 = vmul.f32 0.5, %v199_v21  ;;  %v218_v32 = vmul.f32 %v156_v29, %v393_v59  ;;  %v222_v43 = vmul.f32 %v196_v28, %v389_v57  ;;  %vm213_vm9 = vweird.f32 %v474_v19 }
 0x116   :  { %v232_v34 = vmul.f32 %v466_v12, %v220_v27  ;;  %v180_v37 = vmul.f32 0.5, %v179_v33 }
 0x117   :  { %v230_v35 = vmul.f32 %v466_v12, %v218_v32  ;;  %v201_v36 = vsub.f32 1.5, %v200_v30  ;;  %v234_v60 = vmul.f32 %v466_v12, %v222_v43 }
 0x118   :  { %v244_v39 = vadd.f32 %v267_v25, %v232_v34  ;;  %v181_v42 = vsub.f32 1.5, %v180_v37  ;;  %v285_v59 = vpop.eup %284 }
 0x119   :  { %v242_v41 = vadd.f32 %v267_v25, %v230_v35  ;;  %v202_v49 = vmul.f32 %v461_v11, %v201_v36  ;;  %v208_v51 = vmul.f32 %v285_v59, %v474_v19  ;;  %vm214_vm8 = vweird.f32 %v285_v59 }
 0x11a   :  { %v250_v47 = vadd.f32 %v244_v39, %v243_v58  ;;  %v182_v50 = vmul.f32 %v283_v20, %v181_v42  ;;  %v246_v1 = vadd.f32 %v267_v25, %v234_v60  ;;  %vm215_vm10 = vmor %vm213_vm9, %vm214_vm8 }
 0x11b   :  { %v249_v46 = vadd.f32 %v242_v41, %v241_v40  ;;  %v209_v56 = vmul.f32 %v285_v59, %v208_v51  ;;  %v206_v52 = vsel %vm205_vm7, %v461_v11, %v202_v49 }
 0x11c   :  { %v254_v53 = vmul.f32 0.5, %v250_v47  ;;  %v186_v55 = vsel %vm185_vm6, %v283_v20, %v182_v50  ;;  %v223_v2 = vmul.f32 %v206_v52, %v411_v3 }
 0x11d   :  { %v253_v54 = vmul.f32 0.5, %v249_v46  ;;  %v221_v57 = vmul.f32 %v186_v55, %v402_v63  ;;  %v210_v61 = vmul.f32 0.5, %v209_v56 }
 0x11e   :  { %258 = vst.msk [vmem:[%s537_s4 + $0x2] sm:$0x3] %vm41_vm0, %v254_v53  ;;  %v235_v6 = vmul.f32 %v466_v12, %v223_v2 }
 0x11f   :  { %257 = vst.msk [vmem:[%s537_s4] sm:$0x3] %vm41_vm0, %v253_v54  ;;  %v233_v62 = vmul.f32 %v466_v12, %v221_v57  ;;  %v211_v0 = vsub.f32 1.5, %v210_v61 }
 0x120   :  { %v247_v3 = vadd.f32 %v267_v25, %v235_v6 }
 0x121   :  { %v245_v4 = vadd.f32 %v267_v25, %v233_v62  ;;  %v212_v48 = vmul.f32 %v285_v59, %v211_v0 }
 0x123   :  { %v251_v63 = vadd.f32 %v246_v1, %v245_v4  ;;  %v216_v5 = vsel %vm215_vm10, %v285_v59, %v212_v48 }
 0x124   :  { %v224_v8 = vmul.f32 %v216_v5, %v415_v10 }
 0x125   :  { %v255_v7 = vmul.f32 0.5, %v251_v63 }
 0x126   :  { %v236_v9 = vmul.f32 %v466_v12, %v224_v8 }
 0x127   :  { %259 = vst.msk [vmem:[%s537_s4 + $0x4] sm:$0x3] %vm41_vm0, %v255_v7 }
 0x128   :  { %v248_v11 = vadd.f32 %v267_v25, %v236_v9 }
 0x12a   :  { %v252_v13 = vadd.f32 %v248_v11, %v247_v3 }
 0x12c   :  { %v256_v14 = vmul.f32 0.5, %v252_v13 }
 0x12e   :  { %260 = vst.msk [vmem:[%s537_s4 + $0x6] sm:$0x3] %vm41_vm0, %v256_v14 }

// kernel: res_layer_norm_gru_forward.7
= control target key start
LH: loop header
LB: loop body
LE: loop exit
PB: predicated region body
PF: predicated region fallthrough
CT: control target
= control target key end

     0   :  { %vm37_vm0 = vcmask 254976   ;;  %vm66_vm1 = vcmask 261120   ;;  %s1379_s4 = inlined_call_operand.vmem [shape: bf16[32,32], index: 4, kind: input, shape index: {}]   ;;  %s1380_s5 = inlined_call_operand.vmem [shape: bf16[32,32], index: 5, kind: input, shape index: {}]   ;;  %s1381_s3 = inlined_call_operand.vmem [shape: f32[2,32], index: 3, kind: input, shape index: {}]   ;;  %s1382_s6 = inlined_call_operand.vmem [shape: bf16[32,32], index: 6, kind: input, shape index: {}]   ;;  %s1383_s7 = inlined_call_operand.vmem [shape: f32[1,32], index: 7, kind: input, shape index: {}]   ;;  %s1384_s0 = inlined_call_operand.vmem [shape: f32[8,2,32], index: 0, kind: input, shape index: {}]   ;;  %s1385_s1 = inlined_call_operand.vmem [shape: f32[8,2,32], index: 1, kind: input, shape index: {}]   ;;  %s1386_s2 = inlined_call_operand.vmem [shape: f32[8,2,32], index: 2, kind: input, shape index: {}]   ;;  %s1387_s8 = inlined_call_operand.vmem [shape: f32[8,2,32], index: 8, kind: output, shape index: {0}]   ;;  %s1388_s9 = inlined_call_operand.vmem [shape: f32[2,32], index: 9, kind: output, shape index: {1}]  }
   0x1   :  { %v1119_v0 = vld [vmem:[%s1379_s4 + $0x8] sm:$0xff]  ;;  %v36_v2 = vld [vmem:[%s1381_s3] sm:$0x3]  ;;  %v921_v56 = vld [vmem:[%s1385_s1 + $0x2] sm:$0x3] }
   0x2   :  { %v1124_v1 = vld [vmem:[%s1380_s5 + $0x8] sm:$0xff]  ;;  %76 = vmatpush.bf16.msra.mxu0 %v1119_v0  ;;  %v1139_v4 = vld [vmem:[%s1379_s4] sm:$0xff]  ;;  %38 = vst.msk [vmem:[#allocation2] sm:$0x3] %vm37_vm0, %v36_v2  ;;  %198 = vmatpush.bf16.msra.mxu3 %v1119_v0 }
   0x3   :  { %v1132_v3 = vld [vmem:[%s1382_s6 + $0x8] sm:$0xff]  ;;  %101 = vmatpush.bf16.msra.mxu1 %v1124_v1  ;;  %v1144_v5 = vld [vmem:[%s1380_s5] sm:$0xff] }
   0x4   :  { %129 = vmatpush.bf16.msra.mxu2 %v1132_v3  ;;  %v1151_v6 = vld [vmem:[%s1382_s6] sm:$0xff] }
   0x5   :  { %v136_v9 = vld [vmem:[%s1384_s0] sm:$0x3]  ;;  %v919_v61 = vld [vmem:[%s1384_s0 + $0x2] sm:$0x3] }
   0x6   :  { %77 = vmatpush.bf16.msra.mxu0 %v1139_v4  ;;  %199 = vmatpush.bf16.msra.mxu3 %v1139_v4  ;;  %v157_v10 = vld [vmem:[%s1385_s1] sm:$0x3] }
   0x7   :  { %102 = vmatpush.bf16.msra.mxu1 %v1144_v5  ;;  %v1188_v29 = vld [vmem:[%s1383_s7] ss:$0 sm:$0xff] }
   0x8   :  { %130 = vmatpush.bf16.msra.mxu2 %v1151_v6  ;;  %v178_v41 = vld [vmem:[%s1386_s2] sm:$0x3] }
   0x9   :  { %v1160_v7 = vld [vmem:[#allocation2] sm:$0x3] }
   0xa   :  { %211 = vmatpush.bf16.msrb.mxu0 %v1124_v1  ;;  %309 = vmatpush.bf16.msrb.mxu3 %v1124_v1  ;;  %v53_v8 = vpack.c.bf16 %v1160_v7, %v1160_v7 }
   0xb   :  { %224 = vmatpush.bf16.msrb.mxu1 %v1132_v3 }
   0xc   :  { %296 = vmatpush.bf16.msrb.mxu2 %v1119_v0  ;;  %895 = vmatmul.msk.bf16.vlgmr.msra.gmra.mxu0 %vm66_vm1, %v53_v8 }
   0xd   :  { %904 = vmatmul.msk.bf16.vlgmr.msra.gmra.mxu1 %vm66_vm1, %v53_v8  ;;  %913 = vmatmul.msk.bf16.vlgmr.msra.gmra.mxu2 %vm66_vm1, %v53_v8 }
   0xe   :  { %212 = vmatpush.bf16.msrb.mxu0 %v1144_v5  ;;  %310 = vmatpush.bf16.msrb.mxu3 %v1144_v5 }
   0xf   :  { %225 = vmatpush.bf16.msrb.mxu1 %v1151_v6 }
  0x10   :  { %297 = vmatpush.bf16.msrb.mxu2 %v1139_v4 }
  0x12   :  { %322 = vmatpush.bf16.msra.mxu0 %v1132_v3 }
  0x13   :  { %394 = vmatpush.bf16.msra.mxu1 %v1119_v0 }
  0x14   :  { %407 = vmatpush.bf16.msra.mxu2 %v1124_v1 }
  0x16   :  { %323 = vmatpush.bf16.msra.mxu0 %v1151_v6 }
  0x17   :  { %395 = vmatpush.bf16.msra.mxu1 %v1139_v4 }
  0x18   :  { %408 = vmatpush.bf16.msra.mxu2 %v1144_v5 }
  0x89   :  { %v79_v11 = vpop.f32.mrf.mxu0 }
  0x8a   :  { %v104_v12 = vpop.f32.mrf.mxu1  ;;  %v137_v13 = vadd.f32 %v136_v9, %v79_v11 }
  0x8b   :  { %v158_v14 = vadd.f32 %v157_v10, %v104_v12 }
  0x8c   :  { %v914_v15 = vmul.f32 -1.442695, %v137_v13 }
  0x8d   :  { %v915_v16 = vmul.f32 -1.442695, %v158_v14 }
  0x8e   :  { %986 = vpow2.f32 %v914_v15 }
  0x8f   :  { %988 = vpow2.f32 %v915_v16 }
  0x90   :  { %v132_v17 = vpop.f32.mrf.mxu2 }
  0x91   :  { %v81_v18 = vpop.f32.mrf.mxu0  ;;  %v133_v36 = vadd.f32 %v1188_v29, %v132_v17 }
  0x92   :  { %v106_v19 = vpop.f32.mrf.mxu1 }
  0x94   :  { %v987_v20 = vpop.eup %986 }
  0x95   :  { %v989_v21 = vpop.eup %988  ;;  %v141_v22 = vadd.f32 1.0, %v987_v20 }
  0x96   :  { %v162_v23 = vadd.f32 1.0, %v989_v21 }
  0x97   :  { %990 = vrcp.f32 %v141_v22  ;;  %v153_v32 = vand.u32 2147483648, %v141_v22  ;;  %v151_v34 = vand.u32 2147483647, %v141_v22  ;;  %vm147_vm3 = vweird.f32 %v141_v22 }
  0x98   :  { %992 = vrcp.f32 %v162_v23  ;;  %v134_v24 = vpop.f32.mrf.mxu2  ;;  %vm168_vm6 = vweird.f32 %v162_v23  ;;  %v174_v43 = vand.u32 2147483648, %v162_v23  ;;  %v172_v45 = vand.u32 2147483647, %v162_v23 }
  0x99   :  { %v154_v38 = vor.u32 1.1754944e-38, %v153_v32  ;;  %vm152_vm5 = vcmp.eq.f32.partialorder %v151_v34, 8.507059e+37 }
  0x9a   :  { %v175_v48 = vor.u32 1.1754944e-38, %v174_v43  ;;  %vm173_vm9 = vcmp.eq.f32.partialorder %v172_v45, 8.507059e+37 }
  0x9d   :  { %v991_v25 = vpop.eup %990 }
  0x9e   :  { %v993_v26 = vpop.eup %992  ;;  %v143_v27 = vmul.f32 %v991_v25, %v141_v22  ;;  %vm148_vm2 = vweird.f32 %v991_v25 }
  0x9f   :  { %v164_v28 = vmul.f32 %v993_v26, %v162_v23  ;;  %vm149_vm4 = vmor %vm147_vm3, %vm148_vm2  ;;  %vm169_vm7 = vweird.f32 %v993_v26 }
  0xa0   :  { %v144_v30 = vsub.f32 1.0, %v143_v27  ;;  %vm170_vm8 = vmor %vm168_vm6, %vm169_vm7 }
  0xa1   :  { %v165_v31 = vsub.f32 1.0, %v164_v28 }
  0xa2   :  { %v145_v33 = vmul.f32 %v991_v25, %v144_v30 }
  0xa3   :  { %v166_v35 = vmul.f32 %v993_v26, %v165_v31  ;;  %v923_v31 = vld [vmem:[%s1386_s2 + $0x2] sm:$0x3] }
  0xa4   :  { %v146_v37 = vadd.f32 %v991_v25, %v145_v33 }
  0xa5   :  { %v167_v42 = vadd.f32 %v993_v26, %v166_v35 }
  0xa6   :  { %v150_v39 = vsel %vm149_vm4, %v991_v25, %v146_v37 }
  0xa7   :  { %v155_v40 = vsel %vm152_vm5, %v154_v38, %v150_v39  ;;  %v171_v47 = vsel %vm170_vm8, %v993_v26, %v167_v42 }
  0xa8   :  { %v179_v44 = vmul.f32 %v155_v40, %v133_v36  ;;  %v176_v49 = vsel %vm173_vm9, %v175_v48, %v171_v47  ;;  %v930_v47 = vld [vmem:[%s1385_s1 + $0x4] sm:$0x3] }
  0xa9   :  { %v182_v50 = vsub.f32 1.0, %v176_v49  ;;  %v184_v53 = vmul.f32 %v176_v49, %v1160_v7 }
  0xaa   :  { %v180_v46 = vadd.f32 %v179_v44, %v178_v41 }
  0xac   :  { %994 = vtanh.f32 %v180_v46  ;;  %v928_v46 = vld [vmem:[%s1384_s0 + $0x4] sm:$0x3] }
  0xb2   :  { %v995_v51 = vpop.eup %994 }
  0xb3   :  { %v183_v52 = vmul.f32 %v995_v51, %v182_v50 }
  0xb5   :  { %v1195_v54 = vadd.f32 %v184_v53, %v183_v52 }
  0xb7   :  { %187 = vst.msk [vmem:[%s1387_s8] sm:$0x3] %vm37_vm0, %v1195_v54  ;;  %v188_v55 = vpack.c.bf16 %v1195_v54, %v1195_v54 }
  0xb9   :  { %916 = vmatmul.msk.bf16.vlgmr.msra.gmra.mxu3 %vm66_vm1, %v188_v55  ;;  %917 = vmatmul.msk.bf16.vlgmr.msrb.gmra.mxu0 %vm66_vm1, %v188_v55 }
  0xba   :  { %918 = vmatmul.msk.bf16.vlgmr.msrb.gmra.mxu1 %vm66_vm1, %v188_v55  ;;  %420 = vmatpush.bf16.msra.mxu3 %v1132_v3 }
  0xbb   :  { %492 = vmatpush.bf16.msrb.mxu0 %v1119_v0  ;;  %505 = vmatpush.bf16.msrb.mxu1 %v1124_v1 }
  0xbe   :  { %421 = vmatpush.bf16.msra.mxu3 %v1151_v6 }
  0xbf   :  { %493 = vmatpush.bf16.msrb.mxu0 %v1139_v4  ;;  %506 = vmatpush.bf16.msrb.mxu1 %v1144_v5 }
 0x136   :  { %v214_v57 = vpop.f32.mrf.mxu0 }
 0x137   :  { %v255_v58 = vadd.f32 %v921_v56, %v214_v57  ;;  %v227_v59 = vpop.f32.mrf.mxu1 }
 0x138   :  { %v228_v26 = vadd.f32 %v1188_v29, %v227_v59 }
 0x139   :  { %v922_v60 = vmul.f32 -1.442695, %v255_v58 }
 0x13b   :  { %996 = vpow2.f32 %v922_v60 }
 0x13c   :  { %v201_v62 = vpop.f32.mrf.mxu3 }
 0x13d   :  { %v233_v63 = vadd.f32 %v919_v61, %v201_v62 }
 0x13e   :  { %v216_v2 = vpop.f32.mrf.mxu0 }
 0x13f   :  { %v920_v7 = vmul.f32 -1.442695, %v233_v63  ;;  %v229_v8 = vpop.f32.mrf.mxu1 }
 0x141   :  { %v997_v9 = vpop.eup %996  ;;  %998 = vpow2.f32 %v920_v7 }
 0x142   :  { %v259_v10 = vadd.f32 1.0, %v997_v9 }
 0x144   :  { %v203_v11 = vpop.f32.mrf.mxu3  ;;  %1000 = vrcp.f32 %v259_v10  ;;  %v271_v32 = vand.u32 2147483648, %v259_v10  ;;  %vm265_vm15 = vweird.f32 %v259_v10  ;;  %v269_v34 = vand.u32 2147483647, %v259_v10 }
 0x146   :  { %v272_v37 = vor.u32 1.1754944e-38, %v271_v32  ;;  %vm270_vm3 = vcmp.eq.f32.partialorder %v269_v34, 8.507059e+37  ;;  %v937_v34 = vld [vmem:[%s1384_s0 + $0x6] sm:$0x3] }
 0x147   :  { %v999_v12 = vpop.eup %998 }
 0x148   :  { %v237_v13 = vadd.f32 1.0, %v999_v12 }
 0x14a   :  { %1002 = vrcp.f32 %v237_v13  ;;  %v1001_v14 = vpop.eup %1000  ;;  %v249_v20 = vand.u32 2147483648, %v237_v13  ;;  %v247_v22 = vand.u32 2147483647, %v237_v13  ;;  %vm243_vm11 = vweird.f32 %v237_v13 }
 0x14b   :  { %v261_v15 = vmul.f32 %v1001_v14, %v259_v10  ;;  %vm266_vm14 = vweird.f32 %v1001_v14 }
 0x14c   :  { %v250_v25 = vor.u32 1.1754944e-38, %v249_v20  ;;  %vm248_vm13 = vcmp.eq.f32.partialorder %v247_v22, 8.507059e+37  ;;  %vm267_vm2 = vmor %vm265_vm15, %vm266_vm14 }
 0x14d   :  { %v262_v18 = vsub.f32 1.0, %v261_v15 }
 0x14f   :  { %v263_v23 = vmul.f32 %v1001_v14, %v262_v18  ;;  %v932_v18 = vld [vmem:[%s1386_s2 + $0x4] sm:$0x3] }
 0x150   :  { %v1003_v16 = vpop.eup %1002 }
 0x151   :  { %v239_v17 = vmul.f32 %v1003_v16, %v237_v13  ;;  %vm244_vm10 = vweird.f32 %v1003_v16  ;;  %v264_v28 = vadd.f32 %v1001_v14, %v263_v23 }
 0x152   :  { %vm245_vm12 = vmor %vm243_vm11, %vm244_vm10 }
 0x153   :  { %v240_v19 = vsub.f32 1.0, %v239_v17  ;;  %v268_v36 = vsel %vm267_vm2, %v1001_v14, %v264_v28 }
 0x154   :  { %v273_v38 = vsel %vm270_vm3, %v272_v37, %v268_v36 }
 0x155   :  { %v241_v21 = vmul.f32 %v1003_v16, %v240_v19  ;;  %v280_v39 = vsub.f32 1.0, %v273_v38  ;;  %v282_v42 = vmul.f32 %v273_v38, %v1195_v54  ;;  %v939_v38 = vld [vmem:[%s1385_s1 + $0x6] sm:$0x3] }
 0x157   :  { %v242_v24 = vadd.f32 %v1003_v16, %v241_v21 }
 0x159   :  { %v246_v27 = vsel %vm245_vm12, %v1003_v16, %v242_v24 }
 0x15a   :  { %v251_v30 = vsel %vm248_vm13, %v250_v25, %v246_v27 }
 0x15b   :  { %v277_v33 = vmul.f32 %v251_v30, %v228_v26 }
 0x15d   :  { %v278_v35 = vadd.f32 %v923_v31, %v277_v33 }
 0x15f   :  { %1004 = vtanh.f32 %v278_v35 }
 0x165   :  { %v1005_v40 = vpop.eup %1004 }
 0x166   :  { %v281_v41 = vmul.f32 %v1005_v40, %v280_v39 }
 0x168   :  { %v1224_v43 = vadd.f32 %v282_v42, %v281_v41 }
 0x16a   :  { %924 = vst.msk [vmem:[%s1387_s8 + $0x2] sm:$0x3] %vm37_vm0, %v1224_v43  ;;  %v286_v44 = vpack.c.bf16 %v1224_v43, %v1224_v43 }
 0x16c   :  { %925 = vmatmul.msk.bf16.vlgmr.msrb.gmra.mxu2 %vm66_vm1, %v286_v44  ;;  %926 = vmatmul.msk.bf16.vlgmr.msrb.gmra.mxu3 %vm66_vm1, %v286_v44 }
 0x16d   :  { %927 = vmatmul.msk.bf16.vlgmr.msra.gmra.mxu0 %vm66_vm1, %v286_v44  ;;  %518 = vmatpush.bf16.msrb.mxu2 %v1132_v3 }
 0x16e   :  { %590 = vmatpush.bf16.msrb.mxu3 %v1119_v0  ;;  %603 = vmatpush.bf16.msra.mxu0 %v1124_v1 }
 0x171   :  { %519 = vmatpush.bf16.msrb.mxu2 %v1151_v6 }
 0x172   :  { %591 = vmatpush.bf16.msrb.mxu3 %v1139_v4  ;;  %604 = vmatpush.bf16.msra.mxu0 %v1144_v5 }
 0x1ea   :  { %v325_v45 = vpop.f32.mrf.mxu0 }
 0x1eb   :  { %v326_v15 = vadd.f32 %v1188_v29, %v325_v45 }
 0x1ef   :  { %v299_v48 = vpop.f32.mrf.mxu2  ;;  %v312_v49 = vpop.f32.mrf.mxu3 }
 0x1f0   :  { %v331_v50 = vadd.f32 %v928_v46, %v299_v48  ;;  %v353_v51 = vadd.f32 %v930_v47, %v312_v49 }
 0x1f2   :  { %v929_v52 = vmul.f32 -1.442695, %v331_v50  ;;  %v931_v53 = vmul.f32 -1.442695, %v353_v51  ;;  %v327_v54 = vpop.f32.mrf.mxu0 }
 0x1f4   :  { %1006 = vpow2.f32 %v929_v52 }
 0x1f5   :  { %1008 = vpow2.f32 %v931_v53 }
 0x1f7   :  { %v301_v55 = vpop.f32.mrf.mxu2  ;;  %v314_v56 = vpop.f32.mrf.mxu3 }
 0x1fa   :  { %v1007_v57 = vpop.eup %1006 }
 0x1fb   :  { %v1009_v58 = vpop.eup %1008  ;;  %v335_v59 = vadd.f32 1.0, %v1007_v57 }
 0x1fc   :  { %v357_v60 = vadd.f32 1.0, %v1009_v58 }
 0x1fd   :  { %1010 = vrcp.f32 %v335_v59  ;;  %v347_v8 = vand.u32 2147483648, %v335_v59  ;;  %v345_v11 = vand.u32 2147483647, %v335_v59  ;;  %vm341_vm5 = vweird.f32 %v335_v59 }
 0x1fe   :  { %1012 = vrcp.f32 %v357_v60  ;;  %v369_v21 = vand.u32 2147483648, %v357_v60  ;;  %vm363_vm9 = vweird.f32 %v357_v60  ;;  %v367_v22 = vand.u32 2147483647, %v357_v60 }
 0x1ff   :  { %v348_v14 = vor.u32 1.1754944e-38, %v347_v8  ;;  %vm346_vm7 = vcmp.eq.f32.partialorder %v345_v11, 8.507059e+37 }
 0x200   :  { %v370_v25 = vor.u32 1.1754944e-38, %v369_v21  ;;  %vm368_vm11 = vcmp.eq.f32.partialorder %v367_v22, 8.507059e+37  ;;  %v946_v22 = vld [vmem:[%s1384_s0 + $0x8] sm:$0x3] }
 0x203   :  { %v1011_v61 = vpop.eup %1010 }
 0x204   :  { %v1013_v62 = vpop.eup %1012  ;;  %v337_v63 = vmul.f32 %v1011_v61, %v335_v59  ;;  %vm342_vm4 = vweird.f32 %v1011_v61 }
 0x205   :  { %v359_v2 = vmul.f32 %v1013_v62, %v357_v60  ;;  %vm343_vm6 = vmor %vm341_vm5, %vm342_vm4  ;;  %vm364_vm8 = vweird.f32 %v1013_v62 }
 0x206   :  { %v338_v7 = vsub.f32 1.0, %v337_v63  ;;  %vm365_vm10 = vmor %vm363_vm9, %vm364_vm8 }
 0x207   :  { %v360_v9 = vsub.f32 1.0, %v359_v2  ;;  %v941_v2 = vld [vmem:[%s1386_s2 + $0x6] sm:$0x3] }
 0x208   :  { %v339_v10 = vmul.f32 %v1011_v61, %v338_v7 }
 0x209   :  { %v361_v12 = vmul.f32 %v1013_v62, %v360_v9 }
 0x20a   :  { %v340_v13 = vadd.f32 %v1011_v61, %v339_v10 }
 0x20b   :  { %v362_v19 = vadd.f32 %v1013_v62, %v361_v12 }
 0x20c   :  { %v344_v16 = vsel %vm343_vm6, %v1011_v61, %v340_v13 }
 0x20d   :  { %v349_v17 = vsel %vm346_vm7, %v348_v14, %v344_v16  ;;  %v366_v24 = vsel %vm365_vm10, %v1013_v62, %v362_v19 }
 0x20e   :  { %v375_v20 = vmul.f32 %v349_v17, %v326_v15  ;;  %v371_v26 = vsel %vm368_vm11, %v370_v25, %v366_v24 }
 0x20f   :  { %v378_v27 = vsub.f32 1.0, %v371_v26  ;;  %v380_v31 = vmul.f32 %v371_v26, %v1224_v43 }
 0x210   :  { %v376_v23 = vadd.f32 %v932_v18, %v375_v20 }
 0x212   :  { %1014 = vtanh.f32 %v376_v23  ;;  %v948_v23 = vld [vmem:[%s1385_s1 + $0x8] sm:$0x3] }
 0x218   :  { %v1015_v28 = vpop.eup %1014 }
 0x219   :  { %v379_v30 = vmul.f32 %v1015_v28, %v378_v27 }
 0x21b   :  { %v1253_v32 = vadd.f32 %v380_v31, %v379_v30 }
 0x21d   :  { %933 = vst.msk [vmem:[%s1387_s8 + $0x4] sm:$0x3] %vm37_vm0, %v1253_v32  ;;  %v384_v33 = vpack.c.bf16 %v1253_v32, %v1253_v32 }
 0x21f   :  { %934 = vmatmul.msk.bf16.vlgmr.msra.gmra.mxu1 %vm66_vm1, %v384_v33  ;;  %935 = vmatmul.msk.bf16.vlgmr.msra.gmra.mxu2 %vm66_vm1, %v384_v33 }
 0x220   :  { %936 = vmatmul.msk.bf16.vlgmr.msra.gmra.mxu3 %vm66_vm1, %v384_v33  ;;  %616 = vmatpush.bf16.msra.mxu1 %v1132_v3 }
 0x221   :  { %688 = vmatpush.bf16.msra.mxu2 %v1119_v0  ;;  %701 = vmatpush.bf16.msra.mxu3 %v1124_v1 }
 0x224   :  { %617 = vmatpush.bf16.msra.mxu1 %v1151_v6 }
 0x225   :  { %689 = vmatpush.bf16.msra.mxu2 %v1139_v4  ;;  %702 = vmatpush.bf16.msra.mxu3 %v1144_v5 }
 0x29c   :  { %v397_v35 = vpop.f32.mrf.mxu1 }
 0x29d   :  { %v429_v36 = vadd.f32 %v937_v34, %v397_v35 }
 0x29f   :  { %v938_v37 = vmul.f32 -1.442695, %v429_v36 }
 0x2a1   :  { %1016 = vpow2.f32 %v938_v37 }
 0x2a2   :  { %v410_v39 = vpop.f32.mrf.mxu2 }
 0x2a3   :  { %v451_v40 = vadd.f32 %v939_v38, %v410_v39  ;;  %v423_v41 = vpop.f32.mrf.mxu3 }
 0x2a4   :  { %v399_v42 = vpop.f32.mrf.mxu1  ;;  %v424_v61 = vadd.f32 %v1188_v29, %v423_v41 }
 0x2a5   :  { %v940_v43 = vmul.f32 -1.442695, %v451_v40 }
 0x2a7   :  { %v1017_v44 = vpop.eup %1016  ;;  %1018 = vpow2.f32 %v940_v43 }
 0x2a8   :  { %v433_v45 = vadd.f32 1.0, %v1017_v44 }
 0x2aa   :  { %1020 = vrcp.f32 %v433_v45  ;;  %v412_v46 = vpop.f32.mrf.mxu2  ;;  %v445_v53 = vand.u32 2147483648, %v433_v45  ;;  %v443_v55 = vand.u32 2147483647, %v433_v45  ;;  %vm439_vm13 = vweird.f32 %v433_v45 }
 0x2ab   :  { %v425_v47 = vpop.f32.mrf.mxu3 }
 0x2ac   :  { %v446_v59 = vor.u32 1.1754944e-38, %v445_v53  ;;  %vm444_vm15 = vcmp.eq.f32.partialorder %v443_v55, 8.507059e+37 }
 0x2ad   :  { %v1019_v48 = vpop.eup %1018 }
 0x2ae   :  { %v455_v49 = vadd.f32 1.0, %v1019_v48 }
 0x2b0   :  { %v1021_v50 = vpop.eup %1020  ;;  %1022 = vrcp.f32 %v455_v49  ;;  %v467_v8 = vand.u32 2147483648, %v455_v49  ;;  %v465_v10 = vand.u32 2147483647, %v455_v49  ;;  %vm461_vm3 = vweird.f32 %v455_v49 }
 0x2b1   :  { %v435_v51 = vmul.f32 %v1021_v50, %v433_v45  ;;  %vm440_vm12 = vweird.f32 %v1021_v50 }
 0x2b2   :  { %vm441_vm14 = vmor %vm439_vm13, %vm440_vm12  ;;  %v468_v13 = vor.u32 1.1754944e-38, %v467_v8  ;;  %vm466_vm5 = vcmp.eq.f32.partialorder %v465_v10, 8.507059e+37 }
 0x2b3   :  { %v436_v52 = vsub.f32 1.0, %v435_v51  ;;  %v950_v51 = vld [vmem:[%s1386_s2 + $0x8] sm:$0x3] }
 0x2b5   :  { %v437_v54 = vmul.f32 %v1021_v50, %v436_v52 }
 0x2b6   :  { %v1023_v56 = vpop.eup %1022 }
 0x2b7   :  { %v457_v57 = vmul.f32 %v1023_v56, %v455_v49  ;;  %v438_v58 = vadd.f32 %v1021_v50, %v437_v54  ;;  %vm462_vm2 = vweird.f32 %v1023_v56 }
 0x2b8   :  { %vm463_vm4 = vmor %vm461_vm3, %vm462_vm2 }
 0x2b9   :  { %v458_v60 = vsub.f32 1.0, %v457_v57  ;;  %v442_v62 = vsel %vm441_vm14, %v1021_v50, %v438_v58 }
 0x2ba   :  { %v447_v63 = vsel %vm444_vm15, %v446_v59, %v442_v62 }
 0x2bb   :  { %v459_v7 = vmul.f32 %v1023_v56, %v458_v60  ;;  %v473_v9 = vmul.f32 %v447_v63, %v424_v61 }
 0x2bd   :  { %v460_v11 = vadd.f32 %v1023_v56, %v459_v7  ;;  %v474_v12 = vadd.f32 %v941_v2, %v473_v9  ;;  %v957_v7 = vld [vmem:[%s1385_s1 + $0xa] sm:$0x3] }
 0x2bf   :  { %v464_v14 = vsel %vm463_vm4, %v1023_v56, %v460_v11  ;;  %1024 = vtanh.f32 %v474_v12  ;;  %v955_v12 = vld [vmem:[%s1384_s0 + $0xa] sm:$0x3] }
 0x2c0   :  { %v469_v15 = vsel %vm466_vm5, %v468_v13, %v464_v14 }
 0x2c1   :  { %v476_v16 = vsub.f32 1.0, %v469_v15  ;;  %v478_v19 = vmul.f32 %v469_v15, %v1253_v32 }
 0x2c5   :  { %v1025_v17 = vpop.eup %1024 }
 0x2c6   :  { %v477_v18 = vmul.f32 %v1025_v17, %v476_v16 }
 0x2c8   :  { %v1282_v20 = vadd.f32 %v478_v19, %v477_v18 }
 0x2ca   :  { %942 = vst.msk [vmem:[%s1387_s8 + $0x6] sm:$0x3] %vm37_vm0, %v1282_v20  ;;  %v482_v21 = vpack.c.bf16 %v1282_v20, %v1282_v20 }
 0x2cc   :  { %943 = vmatmul.msk.bf16.vlgmr.msrb.gmra.mxu0 %vm66_vm1, %v482_v21  ;;  %944 = vmatmul.msk.bf16.vlgmr.msrb.gmra.mxu1 %vm66_vm1, %v482_v21 }
 0x2cd   :  { %945 = vmatmul.msk.bf16.vlgmr.msrb.gmra.mxu2 %vm66_vm1, %v482_v21  ;;  %714 = vmatpush.bf16.msrb.mxu0 %v1132_v3 }
 0x2ce   :  { %786 = vmatpush.bf16.msrb.mxu1 %v1119_v0  ;;  %799 = vmatpush.bf16.msrb.mxu2 %v1124_v1 }
 0x2d1   :  { %715 = vmatpush.bf16.msrb.mxu0 %v1151_v6 }
 0x2d2   :  { %787 = vmatpush.bf16.msrb.mxu1 %v1139_v4  ;;  %800 = vmatpush.bf16.msrb.mxu2 %v1144_v5 }
 0x349   :  { %v495_v24 = vpop.f32.mrf.mxu0  ;;  %v508_v25 = vpop.f32.mrf.mxu1 }
 0x34a   :  { %v527_v26 = vadd.f32 %v946_v22, %v495_v24  ;;  %v549_v0 = vadd.f32 %v948_v23, %v508_v25 }
 0x34c   :  { %v947_v27 = vmul.f32 -1.442695, %v527_v26  ;;  %v949_v1 = vmul.f32 -1.442695, %v549_v0 }
 0x34e   :  { %1026 = vpow2.f32 %v947_v27 }
 0x34f   :  { %1028 = vpow2.f32 %v949_v1 }
 0x350   :  { %v521_v28 = vpop.f32.mrf.mxu2 }
 0x351   :  { %v497_v4 = vpop.f32.mrf.mxu0  ;;  %v510_v30 = vpop.f32.mrf.mxu1  ;;  %v522_v47 = vadd.f32 %v1188_v29, %v521_v28 }
 0x354   :  { %v1027_v5 = vpop.eup %1026 }
 0x355   :  { %v1029_v31 = vpop.eup %1028  ;;  %v531_v32 = vadd.f32 1.0, %v1027_v5 }
 0x356   :  { %v553_v33 = vadd.f32 1.0, %v1029_v31 }
 0x357   :  { %1030 = vrcp.f32 %v531_v32  ;;  %v543_v41 = vand.u32 2147483648, %v531_v32  ;;  %v541_v43 = vand.u32 2147483647, %v531_v32  ;;  %vm537_vm7 = vweird.f32 %v531_v32 }
 0x358   :  { %1032 = vrcp.f32 %v553_v33  ;;  %v523_v34 = vpop.f32.mrf.mxu2  ;;  %v565_v52 = vand.u32 2147483648, %v553_v33  ;;  %vm559_vm11 = vweird.f32 %v553_v33  ;;  %v563_v54 = vand.u32 2147483647, %v553_v33 }
 0x359   :  { %v544_v46 = vor.u32 1.1754944e-38, %v543_v41  ;;  %vm542_vm9 = vcmp.eq.f32.partialorder %v541_v43, 8.507059e+37  ;;  %v959_v34 = vld [vmem:[%s1386_s2 + $0xa] sm:$0x3] }
 0x35a   :  { %v566_v57 = vor.u32 1.1754944e-38, %v565_v52  ;;  %vm564_vm13 = vcmp.eq.f32.partialorder %v563_v54, 8.507059e+37 }
 0x35d   :  { %v1031_v35 = vpop.eup %1030 }
 0x35e   :  { %v1033_v36 = vpop.eup %1032  ;;  %v533_v37 = vmul.f32 %v1031_v35, %v531_v32  ;;  %vm538_vm6 = vweird.f32 %v1031_v35 }
 0x35f   :  { %v555_v38 = vmul.f32 %v1033_v36, %v553_v33  ;;  %vm539_vm8 = vmor %vm537_vm7, %vm538_vm6  ;;  %vm560_vm10 = vweird.f32 %v1033_v36 }
 0x360   :  { %v534_v39 = vsub.f32 1.0, %v533_v37  ;;  %vm561_vm12 = vmor %vm559_vm11, %vm560_vm10 }
 0x361   :  { %v556_v40 = vsub.f32 1.0, %v555_v38 }
 0x362   :  { %v535_v42 = vmul.f32 %v1031_v35, %v534_v39 }
 0x363   :  { %v557_v44 = vmul.f32 %v1033_v36, %v556_v40 }
 0x364   :  { %v536_v45 = vadd.f32 %v1031_v35, %v535_v42 }
 0x365   :  { %v558_v49 = vadd.f32 %v1033_v36, %v557_v44 }
 0x366   :  { %v540_v48 = vsel %vm539_vm8, %v1031_v35, %v536_v45 }
 0x367   :  { %v545_v50 = vsel %vm542_vm9, %v544_v46, %v540_v48  ;;  %v562_v56 = vsel %vm561_vm12, %v1033_v36, %v558_v49  ;;  %v964_v49 = vld [vmem:[%s1384_s0 + $0xc] sm:$0x3] }
 0x368   :  { %v571_v53 = vmul.f32 %v545_v50, %v522_v47  ;;  %v567_v58 = vsel %vm564_vm13, %v566_v57, %v562_v56  ;;  %v966_v50 = vld [vmem:[%s1385_s1 + $0xc] sm:$0x3] }
 0x369   :  { %v574_v59 = vsub.f32 1.0, %v567_v58  ;;  %v576_v62 = vmul.f32 %v567_v58, %v1282_v20 }
 0x36a   :  { %v572_v55 = vadd.f32 %v950_v51, %v571_v53 }
 0x36c   :  { %1034 = vtanh.f32 %v572_v55 }
 0x372   :  { %v1035_v60 = vpop.eup %1034 }
 0x373   :  { %v575_v61 = vmul.f32 %v1035_v60, %v574_v59 }
 0x375   :  { %v1311_v63 = vadd.f32 %v576_v62, %v575_v61 }
 0x377   :  { %951 = vst.msk [vmem:[%s1387_s8 + $0x8] sm:$0x3] %vm37_vm0, %v1311_v63  ;;  %v580_v2 = vpack.c.bf16 %v1311_v63, %v1311_v63 }
 0x379   :  { %952 = vmatmul.msk.bf16.vlgmr.msrb.gmra.mxu3 %vm66_vm1, %v580_v2  ;;  %953 = vmatmul.msk.bf16.vlgmr.msra.gmra.mxu0 %vm66_vm1, %v580_v2 }
 0x37a   :  { %954 = vmatmul.msk.bf16.vlgmr.msra.gmra.mxu1 %vm66_vm1, %v580_v2  ;;  %812 = vmatpush.bf16.msrb.mxu3 %v1132_v3 }
 0x37e   :  { %813 = vmatpush.bf16.msrb.mxu3 %v1151_v6 }
 0x3f6   :  { %v606_v8 = vpop.f32.mrf.mxu0 }
 0x3f7   :  { %v647_v9 = vadd.f32 %v957_v7, %v606_v8  ;;  %v619_v10 = vpop.f32.mrf.mxu1 }
 0x3f8   :  { %v620_v5 = vadd.f32 %v1188_v29, %v619_v10 }
 0x3f9   :  { %v958_v11 = vmul.f32 -1.442695, %v647_v9 }
 0x3fb   :  { %1036 = vpow2.f32 %v958_v11 }
 0x3fc   :  { %v593_v13 = vpop.f32.mrf.mxu3 }
 0x3fd   :  { %v625_v14 = vadd.f32 %v955_v12, %v593_v13 }
 0x3fe   :  { %v608_v15 = vpop.f32.mrf.mxu0 }
 0x3ff   :  { %v956_v16 = vmul.f32 -1.442695, %v625_v14  ;;  %v621_v3 = vpop.f32.mrf.mxu1 }
 0x401   :  { %v1037_v17 = vpop.eup %1036  ;;  %1038 = vpow2.f32 %v956_v16 }
 0x402   :  { %v651_v6 = vadd.f32 1.0, %v1037_v17 }
 0x404   :  { %v595_v18 = vpop.f32.mrf.mxu3  ;;  %1040 = vrcp.f32 %v651_v6  ;;  %v663_v35 = vand.u32 2147483648, %v651_v6  ;;  %vm657_vm5 = vweird.f32 %v651_v6  ;;  %v661_v37 = vand.u32 2147483647, %v651_v6 }
 0x406   :  { %v664_v40 = vor.u32 1.1754944e-38, %v663_v35  ;;  %vm662_vm7 = vcmp.eq.f32.partialorder %v661_v37, 8.507059e+37  ;;  %v975_v35 = vld [vmem:[%s1385_s1 + $0xe] sm:$0x3] }
 0x407   :  { %v1039_v19 = vpop.eup %1038 }
 0x408   :  { %v629_v20 = vadd.f32 1.0, %v1039_v19  ;;  %v968_v19 = vld [vmem:[%s1386_s2 + $0xc] sm:$0x3] }
 0x40a   :  { %1042 = vrcp.f32 %v629_v20  ;;  %v1041_v21 = vpop.eup %1040  ;;  %v641_v0 = vand.u32 2147483648, %v629_v20  ;;  %v639_v1 = vand.u32 2147483647, %v629_v20  ;;  %vm635_vm15 = vweird.f32 %v629_v20 }
 0x40b   :  { %v653_v22 = vmul.f32 %v1041_v21, %v651_v6  ;;  %vm658_vm4 = vweird.f32 %v1041_v21 }
 0x40c   :  { %v642_v30 = vor.u32 1.1754944e-38, %v641_v0  ;;  %vm640_vm3 = vcmp.eq.f32.partialorder %v639_v1, 8.507059e+37  ;;  %vm659_vm6 = vmor %vm657_vm5, %vm658_vm4 }
 0x40d   :  { %v654_v25 = vsub.f32 1.0, %v653_v22 }
 0x40f   :  { %v655_v28 = vmul.f32 %v1041_v21, %v654_v25 }
 0x410   :  { %v1043_v23 = vpop.eup %1042 }
 0x411   :  { %v631_v24 = vmul.f32 %v1043_v23, %v629_v20  ;;  %vm636_vm14 = vweird.f32 %v1043_v23  ;;  %v656_v32 = vadd.f32 %v1041_v21, %v655_v28 }
 0x412   :  { %vm637_vm2 = vmor %vm635_vm15, %vm636_vm14 }
 0x413   :  { %v632_v26 = vsub.f32 1.0, %v631_v24  ;;  %v660_v39 = vsel %vm659_vm6, %v1041_v21, %v656_v32 }
 0x414   :  { %v665_v41 = vsel %vm662_vm7, %v664_v40, %v660_v39 }
 0x415   :  { %v633_v27 = vmul.f32 %v1043_v23, %v632_v26  ;;  %v672_v42 = vsub.f32 1.0, %v665_v41  ;;  %v674_v45 = vmul.f32 %v665_v41, %v1311_v63 }
 0x417   :  { %v634_v4 = vadd.f32 %v1043_v23, %v633_v27 }
 0x419   :  { %v638_v31 = vsel %vm637_vm2, %v1043_v23, %v634_v4 }
 0x41a   :  { %v643_v33 = vsel %vm640_vm3, %v642_v30, %v638_v31  ;;  %v973_v31 = vld [vmem:[%s1384_s0 + $0xe] sm:$0x3] }
 0x41b   :  { %v669_v36 = vmul.f32 %v643_v33, %v620_v5 }
 0x41d   :  { %v670_v38 = vadd.f32 %v959_v34, %v669_v36 }
 0x41f   :  { %1044 = vtanh.f32 %v670_v38 }
 0x425   :  { %v1045_v43 = vpop.eup %1044 }
 0x426   :  { %v673_v44 = vmul.f32 %v1045_v43, %v672_v42 }
 0x428   :  { %v675_v46 = vadd.f32 %v674_v45, %v673_v44 }
 0x42a   :  { %960 = vst.msk [vmem:[%s1387_s8 + $0xa] sm:$0x3] %vm37_vm0, %v675_v46  ;;  %v678_v47 = vpack.c.bf16 %v675_v46, %v675_v46 }
 0x42c   :  { %961 = vmatmul.msk.bf16.vlgmr.msra.gmra.mxu2 %vm66_vm1, %v678_v47  ;;  %962 = vmatmul.msk.bf16.vlgmr.msra.gmra.mxu3 %vm66_vm1, %v678_v47 }
 0x42d   :  { %963 = vmatmul.msk.bf16.vlgmr.msrb.gmra.mxu0 %vm66_vm1, %v678_v47 }
 0x4aa   :  { %v717_v48 = vpop.f32.mrf.mxu0 }
 0x4ab   :  { %v718_v17 = vadd.f32 %v1188_v29, %v717_v48 }
 0x4af   :  { %v691_v51 = vpop.f32.mrf.mxu2  ;;  %v704_v52 = vpop.f32.mrf.mxu3 }
 0x4b0   :  { %v723_v53 = vadd.f32 %v964_v49, %v691_v51  ;;  %v745_v54 = vadd.f32 %v966_v50, %v704_v52 }
 0x4b2   :  { %v965_v55 = vmul.f32 -1.442695, %v723_v53  ;;  %v967_v56 = vmul.f32 -1.442695, %v745_v54  ;;  %v719_v57 = vpop.f32.mrf.mxu0 }
 0x4b4   :  { %1046 = vpow2.f32 %v965_v55 }
 0x4b5   :  { %1048 = vpow2.f32 %v967_v56 }
 0x4b7   :  { %v693_v58 = vpop.f32.mrf.mxu2  ;;  %v706_v59 = vpop.f32.mrf.mxu3 }
 0x4ba   :  { %v1047_v60 = vpop.eup %1046 }
 0x4bb   :  { %v1049_v61 = vpop.eup %1048  ;;  %v727_v62 = vadd.f32 1.0, %v1047_v60 }
 0x4bc   :  { %v749_v63 = vadd.f32 1.0, %v1049_v61  ;;  %v977_v61 = vld [vmem:[%s1386_s2 + $0xe] sm:$0x3] }
 0x4bd   :  { %1050 = vrcp.f32 %v727_v62  ;;  %v739_v11 = vand.u32 2147483648, %v727_v62  ;;  %v737_v14 = vand.u32 2147483647, %v727_v62  ;;  %vm733_vm9 = vweird.f32 %v727_v62 }
 0x4be   :  { %1052 = vrcp.f32 %v749_v63  ;;  %v761_v22 = vand.u32 2147483648, %v749_v63  ;;  %vm755_vm13 = vweird.f32 %v749_v63  ;;  %v759_v23 = vand.u32 2147483647, %v749_v63 }
 0x4bf   :  { %v740_v3 = vor.u32 1.1754944e-38, %v739_v11  ;;  %vm738_vm11 = vcmp.eq.f32.partialorder %v737_v14, 8.507059e+37 }
 0x4c0   :  { %v762_v26 = vor.u32 1.1754944e-38, %v761_v22  ;;  %vm760_vm15 = vcmp.eq.f32.partialorder %v759_v23, 8.507059e+37 }
 0x4c3   :  { %v1051_v2 = vpop.eup %1050 }
 0x4c4   :  { %v1053_v7 = vpop.eup %1052  ;;  %v729_v8 = vmul.f32 %v1051_v2, %v727_v62  ;;  %vm734_vm8 = vweird.f32 %v1051_v2 }
 0x4c5   :  { %v751_v9 = vmul.f32 %v1053_v7, %v749_v63  ;;  %vm735_vm10 = vmor %vm733_vm9, %vm734_vm8  ;;  %vm756_vm12 = vweird.f32 %v1053_v7 }
 0x4c6   :  { %v730_v10 = vsub.f32 1.0, %v729_v8  ;;  %vm757_vm14 = vmor %vm755_vm13, %vm756_vm12 }
 0x4c7   :  { %v752_v12 = vsub.f32 1.0, %v751_v9 }
 0x4c8   :  { %v731_v13 = vmul.f32 %v1051_v2, %v730_v10 }
 0x4c9   :  { %v753_v15 = vmul.f32 %v1053_v7, %v752_v12 }
 0x4ca   :  { %v732_v16 = vadd.f32 %v1051_v2, %v731_v13 }
 0x4cb   :  { %v754_v20 = vadd.f32 %v1053_v7, %v753_v15 }
 0x4cc   :  { %v736_v6 = vsel %vm735_vm10, %v1051_v2, %v732_v16 }
 0x4cd   :  { %v741_v18 = vsel %vm738_vm11, %v740_v3, %v736_v6  ;;  %v758_v25 = vsel %vm757_vm14, %v1053_v7, %v754_v20 }
 0x4ce   :  { %v767_v21 = vmul.f32 %v741_v18, %v718_v17  ;;  %v763_v0 = vsel %vm760_vm15, %v762_v26, %v758_v25 }
 0x4cf   :  { %v770_v27 = vsub.f32 1.0, %v763_v0  ;;  %v772_v4 = vmul.f32 %v763_v0, %v675_v46 }
 0x4d0   :  { %v768_v24 = vadd.f32 %v968_v19, %v767_v21 }
 0x4d2   :  { %1054 = vtanh.f32 %v768_v24 }
 0x4d8   :  { %v1055_v1 = vpop.eup %1054 }
 0x4d9   :  { %v771_v28 = vmul.f32 %v1055_v1, %v770_v27 }
 0x4db   :  { %v773_v30 = vadd.f32 %v772_v4, %v771_v28 }
 0x4dd   :  { %969 = vst.msk [vmem:[%s1387_s8 + $0xc] sm:$0x3] %vm37_vm0, %v773_v30  ;;  %v776_v5 = vpack.c.bf16 %v773_v30, %v773_v30 }
 0x4df   :  { %970 = vmatmul.msk.bf16.vlgmr.msrb.gmra.mxu1 %vm66_vm1, %v776_v5  ;;  %971 = vmatmul.msk.bf16.vlgmr.msrb.gmra.mxu2 %vm66_vm1, %v776_v5 }
 0x4e0   :  { %972 = vmatmul.msk.bf16.vlgmr.msrb.gmra.mxu3 %vm66_vm1, %v776_v5 }
 0x55c   :  { %v789_v32 = vpop.f32.mrf.mxu1 }
 0x55d   :  { %v821_v33 = vadd.f32 %v973_v31, %v789_v32 }
 0x55f   :  { %v974_v34 = vmul.f32 -1.442695, %v821_v33 }
 0x561   :  { %1056 = vpow2.f32 %v974_v34 }
 0x562   :  { %v802_v36 = vpop.f32.mrf.mxu2 }
 0x563   :  { %v843_v37 = vadd.f32 %v975_v35, %v802_v36  ;;  %v815_v38 = vpop.f32.mrf.mxu3 }
 0x564   :  { %v791_v39 = vpop.f32.mrf.mxu1  ;;  %v816_v58 = vadd.f32 %v1188_v29, %v815_v38 }
 0x565   :  { %v976_v40 = vmul.f32 -1.442695, %v843_v37 }
 0x567   :  { %v1057_v41 = vpop.eup %1056  ;;  %1058 = vpow2.f32 %v976_v40 }
 0x568   :  { %v825_v42 = vadd.f32 1.0, %v1057_v41 }
 0x56a   :  { %1060 = vrcp.f32 %v825_v42  ;;  %v804_v43 = vpop.f32.mrf.mxu2  ;;  %v837_v50 = vand.u32 2147483648, %v825_v42  ;;  %v835_v52 = vand.u32 2147483647, %v825_v42  ;;  %vm831_vm2 = vweird.f32 %v825_v42 }
 0x56b   :  { %v817_v44 = vpop.f32.mrf.mxu3 }
 0x56c   :  { %v838_v56 = vor.u32 1.1754944e-38, %v837_v50  ;;  %vm836_vm4 = vcmp.eq.f32.partialorder %v835_v52, 8.507059e+37 }
 0x56d   :  { %v1059_v45 = vpop.eup %1058 }
 0x56e   :  { %v847_v46 = vadd.f32 1.0, %v1059_v45 }
 0x570   :  { %v1061_v47 = vpop.eup %1060  ;;  %1062 = vrcp.f32 %v847_v46  ;;  %v859_v63 = vand.u32 2147483648, %v847_v46  ;;  %v857_v7 = vand.u32 2147483647, %v847_v46  ;;  %vm853_vm6 = vweird.f32 %v847_v46 }
 0x571   :  { %v827_v48 = vmul.f32 %v1061_v47, %v825_v42  ;;  %vm832_vm1 = vweird.f32 %v1061_v47 }
 0x572   :  { %vm833_vm3 = vmor %vm831_vm2, %vm832_vm1  ;;  %v860_v10 = vor.u32 1.1754944e-38, %v859_v63  ;;  %vm858_vm8 = vcmp.eq.f32.partialorder %v857_v7, 8.507059e+37 }
 0x573   :  { %v828_v49 = vsub.f32 1.0, %v827_v48 }
 0x575   :  { %v829_v51 = vmul.f32 %v1061_v47, %v828_v49 }
 0x576   :  { %v1063_v53 = vpop.eup %1062 }
 0x577   :  { %v849_v54 = vmul.f32 %v1063_v53, %v847_v46  ;;  %v830_v55 = vadd.f32 %v1061_v47, %v829_v51  ;;  %vm854_vm5 = vweird.f32 %v1063_v53 }
 0x578   :  { %vm855_vm7 = vmor %vm853_vm6, %vm854_vm5 }
 0x579   :  { %v850_v57 = vsub.f32 1.0, %v849_v54  ;;  %v834_v59 = vsel %vm833_vm3, %v1061_v47, %v830_v55 }
 0x57a   :  { %v839_v60 = vsel %vm836_vm4, %v838_v56, %v834_v59 }
 0x57b   :  { %v851_v62 = vmul.f32 %v1063_v53, %v850_v57  ;;  %v865_v2 = vmul.f32 %v839_v60, %v816_v58 }
 0x57d   :  { %v852_v8 = vadd.f32 %v1063_v53, %v851_v62  ;;  %v866_v9 = vadd.f32 %v977_v61, %v865_v2 }
 0x57f   :  { %v856_v11 = vsel %vm855_vm7, %v1063_v53, %v852_v8  ;;  %1064 = vtanh.f32 %v866_v9 }
 0x580   :  { %v861_v29 = vsel %vm858_vm8, %v860_v10, %v856_v11 }
 0x581   :  { %v868_v12 = vsub.f32 1.0, %v861_v29  ;;  %v870_v15 = vmul.f32 %v861_v29, %v773_v30 }
 0x585   :  { %v1065_v13 = vpop.eup %1064 }
 0x586   :  { %v869_v14 = vmul.f32 %v1065_v13, %v868_v12 }
 0x588   :  { %v871_v16 = vadd.f32 %v870_v15, %v869_v14 }
 0x58a   :  { %978 = vst.msk [vmem:[%s1387_s8 + $0xe] sm:$0x3] %vm37_vm0, %v871_v16 }
 0x58b   :  { %874 = vst.msk [vmem:[#allocation2] sm:$0x3] %vm37_vm0, %v871_v16 }
 0x58c   :  { %878 = vst.msk [vmem:[%s1388_s9] sm:$0x3] %vm37_vm0, %v871_v16 }

</bundles_post_ra>
